<compile_context>
chip_gen: v5e
topology: v5e:2x2
jax: 0.10.0
libtpu: 0.0.40
codegen_flags: <defaults>
</compile_context>

<pallas_src>
import functools

import jax
import jax.numpy as jnp
from jax import lax
from jax.experimental import pallas as pl
from jax.experimental.pallas import tpu as pltpu

LANE = 128


def _round_up(x, m):
    return (x + m - 1) // m * m


def _pick_tb(n, tb_max=8):
    """Batch-block size: amortize grid-step overhead but keep >=2 grid steps."""
    if n >= 2 * tb_max:
        return tb_max
    return max(1, n // 2)


# ---------------------------------------------------------------------------
# Fused Pallas kernel: conv1+BN+ReLU -> conv2(stride2)+BN+ReLU -> GAP -> head
# ---------------------------------------------------------------------------

def _ngc_fused_kernel(TB, H, W, x_ref, w1_ref, b1_ref, w2_ref, b2_ref,
                      fcw_ref, fcb_ref, logits_ref, feat_ref,
                      s0, s1, s2, s3):
    """Whole NGC forward for TB images, entirely in VMEM.

    x_ref   : (TB, H*W, KP)   conv1 im2col, parity-permuted row order   (bf16)
    w1_ref  : (KP, C1P)       conv1 weights (K=9*Cin padded), BN folded (bf16)
    b1_ref  : (1, C1P)        conv1 folded-BN bias                      (f32)
    w2_ref  : (9, C1P, C2P)   conv2 weights per tap, BN folded          (bf16)
    b2_ref  : (1, C2P)        conv2 folded-BN bias                      (f32)
    fcw_ref : (C2P, NCP)      head weight (transposed, padded)          (bf16)
    fcb_ref : (1, NCP)        head bias                                 (f32)
    logits_ref : (1, TB, NCP) output logits
    feat_ref   : (1, TB, C2P) output pooled features
    s0..s3  : (TB, H/2+1, W/2+1, C1P) bf16 VMEM scratches -- the conv1
              activation split into 4 padded-parity sub-grids so the stride-2
              conv2 taps are contiguous slices.
    """
    HW = H * W
    HO, WO = H // 2, W // 2
    KP = x_ref.shape[-1]
    C1P = w1_ref.shape[-1]
    C2P = w2_ref.shape[-1]
    NCP = fcw_ref.shape[-1]

    # ---- conv1: single im2col matmul, folded BN, ReLU ----------------------
    xv = x_ref[...].reshape(TB * HW, KP)                       # bf16
    acc1 = jnp.dot(xv, w1_ref[...], preferred_element_type=jnp.float32)
    h1 = jnp.maximum(acc1 + b1_ref[...], 0.0).astype(jnp.bfloat16)
    # Row order is (image, parity-block, ii, jj); regroup per parity block.
    h1r = h1.reshape(TB, 4 * HO, WO, C1P)

    scr = (s0, s1, s2, s3)     # (even,even) (even,odd) (odd,even) (odd,odd) padded parity

    # Zero ONLY the halo entries conv2 reads (padded row 0 / col 0), not the
    # whole scratch; interior is fully overwritten below.  No program_id==0
    # guard (would break under megacore).
    zrow = jnp.zeros((TB, 1, WO + 1, C1P), jnp.bfloat16)
    zcol = jnp.zeros((TB, HO + 1, 1, C1P), jnp.bfloat16)
    s0[:, 0:1, :, :] = zrow
    s1[:, 0:1, :, :] = zrow
    s0[:, :, 0:1, :] = zcol
    s2[:, :, 0:1, :] = zcol

    # Contiguous interior stores of the conv1 activation into the sub-grids.
    offs = ((1, 1), (1, 0), (0, 1), (0, 0))
    for k in range(4):
        ro, co = offs[k]
        scr[k][:, ro:ro + HO, co:co + WO, :] = h1r[:, k * HO:(k + 1) * HO, :, :]

    # ---- conv2: 3x3, stride 2, pad 1, folded BN, ReLU -----------------------
    # Each tap (di, dj) is a contiguous (TB, HO, WO, C1P) slice of one parity
    # sub-grid -> 9 accumulated (TB*HO*WO, C1P) x (C1P, C2P) bf16 matmuls.
    acc2 = jnp.zeros((TB * HO * WO, C2P), jnp.float32)
    for di in range(3):
        for dj in range(3):
            blk = (di % 2) * 2 + (dj % 2)
            i0, j0 = di // 2, dj // 2
            xs = scr[blk][:, i0:i0 + HO, j0:j0 + WO, :].reshape(TB * HO * WO, C1P)
            acc2 = acc2 + jnp.dot(xs, w2_ref[di * 3 + dj],
                                  preferred_element_type=jnp.float32)
    h2 = jnp.maximum(acc2 + b2_ref[...], 0.0)                  # (TB*HO*WO, C2P)

    # ---- neck: global average pooling over the stride-2 output grid ---------
    feat = jnp.sum(h2.reshape(TB, HO * WO, C2P), axis=1) * (1.0 / (HO * WO))

    # ---- head: linear classifier --------------------------------------------
    logits = jnp.dot(feat.astype(jnp.bfloat16), fcw_ref[...],
                     preferred_element_type=jnp.float32) + fcb_ref[...]

    logits_ref[...] = logits.reshape(1, TB, NCP)
    feat_ref[...] = feat.reshape(1, TB, C2P)


def fused_ngc_forward(x_im2col, prep, H, W, tb):
    """x_im2col: (N, H*W, KP) bf16 conv1 im2col in parity-permuted row order."""
    N, HW, KP = x_im2col.shape
    C1P = prep["w1"].shape[-1]
    C2P = prep["w2"].shape[-1]
    NCP = prep["fc_w"].shape[-1]

    G = -(-N // tb)
    n_pad = G * tb
    if n_pad != N:
        x_im2col = jnp.pad(x_im2col, ((0, n_pad - N), (0, 0), (0, 0)))

    HO, WO = H // 2, W // 2
    kernel = functools.partial(_ngc_fused_kernel, tb, H, W)
    logits_p, feat_p = pl.pallas_call(
        kernel,
        out_shape=(
            jax.ShapeDtypeStruct((G, tb, NCP), jnp.float32),
            jax.ShapeDtypeStruct((G, tb, C2P), jnp.float32),
        ),
        grid=(G,),
        in_specs=[
            pl.BlockSpec((tb, HW, KP), lambda g: (g, 0, 0)),
            pl.BlockSpec((KP, C1P), lambda g: (0, 0)),
            pl.BlockSpec((1, C1P), lambda g: (0, 0)),
            pl.BlockSpec((9, C1P, C2P), lambda g: (0, 0, 0)),
            pl.BlockSpec((1, C2P), lambda g: (0, 0)),
            pl.BlockSpec((C2P, NCP), lambda g: (0, 0)),
            pl.BlockSpec((1, NCP), lambda g: (0, 0)),
        ],
        out_specs=(
            pl.BlockSpec((1, tb, NCP), lambda g: (g, 0, 0)),
            pl.BlockSpec((1, tb, C2P), lambda g: (g, 0, 0)),
        ),
        scratch_shapes=[pltpu.VMEM((tb, HO + 1, WO + 1, C1P), jnp.bfloat16)
                        for _ in range(4)],
        compiler_params=pltpu.CompilerParams(
            dimension_semantics=("parallel",),     # batch-block axis -> megacore
        ),
    )(x_im2col, prep["w1"], prep["b1"], prep["w2"], prep["b2"],
      prep["fc_w"], prep["fc_b"])
    return logits_p.reshape(G * tb, NCP), feat_p.reshape(G * tb, C2P)


# ---------------------------------------------------------------------------
# Input prep: NCHW -> parity-permuted conv1 im2col (tiny; done once in XLA)
# ---------------------------------------------------------------------------

def _build_conv1_im2col(img_nchw):
    x = jnp.transpose(img_nchw, (0, 2, 3, 1)).astype(jnp.float32)   # NHWC
    N, H, W, Cin = x.shape
    assert H % 2 == 0 and W % 2 == 0, "stride-2 conv2 path assumes even H, W"

    xp = jnp.pad(x, ((0, 0), (1, 1), (1, 1), (0, 0)))
    patches = jnp.stack([xp[:, di:di + H, dj:dj + W, :]
                         for di in range(3) for dj in range(3)], axis=3)
    patches = patches.reshape(N, H, W, 9 * Cin)                  # (N,H,W,9*Cin)

    # Parity-permuted row order (matches the kernel's 4 padded-parity sub-grids):
    #   block 0: odd rows / odd cols, 1: odd/even, 2: even/odd, 3: even/even.
    blocks = jnp.stack([
        patches[:, 1::2, 1::2],
        patches[:, 1::2, 0::2],
        patches[:, 0::2, 1::2],
        patches[:, 0::2, 0::2],
    ], axis=1)                                                   # (N,4,H/2,W/2,K)
    x_im2col = blocks.reshape(N, H * W, 9 * Cin)

    K = 9 * Cin
    KP = _round_up(K, LANE)
    x_im2col = jnp.pad(x_im2col, ((0, 0), (0, 0), (0, KP - K))).astype(jnp.bfloat16)
    return x_im2col, H, W


# ---------------------------------------------------------------------------
# One-time parameter preprocessing (BN folding, transposes, lane padding, bf16)
# ---------------------------------------------------------------------------

def fold_bn(gamma, beta, mean, var, eps=1e-5):
    scale = gamma / jnp.sqrt(var + eps)
    bias = beta - mean * scale
    return scale, bias


def prepare_params(params):
    c1, cin = params["conv1_w"].shape[:2]
    c2 = params["conv2_w"].shape[0]
    nc = params["fc_w"].shape[0]
    K = 9 * cin
    KP = _round_up(K, LANE)
    C1P = _round_up(c1, LANE)
    C2P = _round_up(c2, LANE)
    NCP = _round_up(nc, LANE)

    s1, b1 = fold_bn(*params["bn1"])
    s2, b2 = fold_bn(*params["bn2"])

    # conv1: (C1, Cin, 3, 3) -> (3,3,Cin,C1) -> (9*Cin, C1), fold BN1, pad K & C1.
    w1 = jnp.transpose(params["conv1_w"], (2, 3, 1, 0)) * s1[None, None, None, :]
    w1 = jnp.pad(w1.reshape(K, c1), ((0, KP - K), (0, C1P - c1)))

    # conv2: (C2, C1, 3, 3) -> (3,3,C1,C2) -> (9, C1, C2), fold BN2, pad.
    w2 = jnp.transpose(params["conv2_w"], (2, 3, 1, 0)) * s2[None, None, None, :]
    w2 = jnp.pad(w2.reshape(9, c1, c2), ((0, 0), (0, C1P - c1), (0, C2P - c2)))

    fcw = jnp.pad(params["fc_w"].T, ((0, C2P - c2), (0, NCP - nc)))

    return {
        "w1": w1.astype(jnp.bfloat16),
        "b1": jnp.pad(b1, (0, C1P - c1)).reshape(1, C1P).astype(jnp.float32),
        "w2": w2.astype(jnp.bfloat16),
        "b2": jnp.pad(b2, (0, C2P - c2)).reshape(1, C2P).astype(jnp.float32),
        "fc_w": fcw.astype(jnp.bfloat16),
        "fc_b": jnp.pad(params["fc_b"], (0, NCP - nc)).reshape(1, NCP).astype(jnp.float32),
        "num_classes": nc,
        "feat_dim": c2,
    }


def init_params(key, cin=4, c1=16, c2=32, num_classes=10):
    ks = jax.random.split(key, 10)
    return {
        "conv1_w": jax.random.normal(ks[0], (c1, cin, 3, 3), jnp.float32) * 0.1,
        "bn1": (jax.random.normal(ks[1], (c1,)) * 0.1 + 1.0,
                jax.random.normal(ks[2], (c1,)) * 0.1,
                jax.random.normal(ks[3], (c1,)) * 0.1,
                jnp.abs(jax.random.normal(ks[4], (c1,))) * 0.1 + 1.0),
        "conv2_w": jax.random.normal(ks[5], (c2, c1, 3, 3), jnp.float32) * 0.1,
        "bn2": (jax.random.normal(ks[6], (c2,)) * 0.1 + 1.0,
                jax.random.normal(ks[7], (c2,)) * 0.1,
                jax.random.normal(ks[8], (c2,)) * 0.1,
                jnp.abs(jax.random.normal(ks[9], (c2,))) * 0.1 + 1.0),
        "fc_w": jax.random.normal(jax.random.fold_in(key, 100),
                                  (num_classes, c2), jnp.float32) * 0.1,
        "fc_b": jax.random.normal(jax.random.fold_in(key, 101),
                                  (num_classes,), jnp.float32) * 0.1,
    }


# ---------------------------------------------------------------------------
# NGCInference forward: head(neck(backbone(img)))
# ---------------------------------------------------------------------------

def ngc_inference(img_nchw, prep, do_classify=True, do_extract_feature=False, tb=None):
    N = img_nchw.shape[0]
    x_im2col, H, W = _build_conv1_im2col(img_nchw)
    if tb is None:
        tb = _pick_tb(N)

    logits_p, feat_p = fused_ngc_forward(x_im2col, prep, H, W, tb)
    logits = logits_p[:N, :prep["num_classes"]]
    feat = feat_p[:N, :prep["feat_dim"]]

    outputs = []
    if do_classify:
        outputs.append(logits)
    if do_extract_feature:
        outputs.append(feat)
    if len(outputs) == 1:
        return outputs[0]
    return tuple(outputs)


# ---------------------------------------------------------------------------
# Pure-JAX reference (correctness sanity check)
# ---------------------------------------------------------------------------

def _reference_forward(img_nchw, params):
    x = jnp.transpose(img_nchw, (0, 2, 3, 1)).astype(jnp.float32)

    def conv_bn_relu(x, w_oihw, bn, stride):
        y = lax.conv_general_dilated(
            x, jnp.transpose(w_oihw, (2, 3, 1, 0)),       # OIHW -> HWIO
            window_strides=(stride, stride), padding=((1, 1), (1, 1)),
            dimension_numbers=("NHWC", "HWIO", "NHWC"))
        g, b, m, v = bn
        y = (y - m) / jnp.sqrt(v + 1e-5) * g + b
        return jnp.maximum(y, 0.0)

    x = conv_bn_relu(x, params["conv1_w"], params["bn1"], 1)
    x = conv_bn_relu(x, params["conv2_w"], params["bn2"], 2)
    feat = jnp.mean(x, axis=(1, 2))
    logits = feat @ params["fc_w"].T + params["fc_b"][None, :]
    return logits, feat


if __name__ == "__main__":
    key = jax.random.PRNGKey(0)
    pkey, xkey = jax.random.split(key)

    params = init_params(pkey, cin=4, c1=16, c2=32, num_classes=10)
    img = jax.random.normal(xkey, (2, 4, 16, 16), jnp.float32)   # NCHW input

    prep = prepare_params(params)   # one-time: BN fold + pad + bf16 cast

    logits, feats = ngc_inference(img, prep,
                                  do_classify=True, do_extract_feature=True)
    jax.block_until_ready(logits)
    jax.block_until_ready(feats)

    assert logits.shape == (2, 10), logits.shape
    assert feats.shape == (2, 32), feats.shape

    # Sanity check against a pure-JAX f32 reference (bf16 MXU operands -> loose tol).
    ref_logits, ref_feats = _reference_forward(img, params)
    assert jnp.allclose(logits, ref_logits, atol=5e-2, rtol=5e-2), (
        float(jnp.max(jnp.abs(logits - ref_logits))))
    assert jnp.allclose(feats, ref_feats, atol=5e-2, rtol=5e-2), (
        float(jnp.max(jnp.abs(feats - ref_feats))))

    print("KERNEL_OK")
</pallas_src>

<mosaic_0001>
module attributes {stable_mosaic.version = 11 : i64} {
  func.func @_ngc_fused_kernel(%arg0: i32, %arg1: memref<1x256x128xbf16, #tpu.memory_space<vmem>>, %arg2: memref<128x128xbf16, #tpu.memory_space<vmem>>, %arg3: memref<1x128xf32, #tpu.memory_space<vmem>>, %arg4: memref<9x128x128xbf16, #tpu.memory_space<vmem>>, %arg5: memref<1x128xf32, #tpu.memory_space<vmem>>, %arg6: memref<128x128xbf16, #tpu.memory_space<vmem>>, %arg7: memref<1x128xf32, #tpu.memory_space<vmem>>, %arg8: memref<1x1x128xf32, #tpu.memory_space<vmem>>, %arg9: memref<1x1x128xf32, #tpu.memory_space<vmem>>, %arg10: memref<1x9x9x128xbf16, #tpu.memory_space<vmem>>, %arg11: memref<1x9x9x128xbf16, #tpu.memory_space<vmem>>, %arg12: memref<1x9x9x128xbf16, #tpu.memory_space<vmem>>, %arg13: memref<1x9x9x128xbf16, #tpu.memory_space<vmem>>) attributes {dimension_semantics = [#tpu.dimension_semantics<parallel>], iteration_bounds = array<i64: 2>, scalar_prefetch = 0 : i64, scratch_operands = 4 : i64, tpu.core_type = #tpu.core_type<tc>, window_params = [{transform_indices = @transform_0, window_bounds = array<i64: 1, 256, 128>}, {pipeline_mode = #tpu.pipeline_mode<synchronous>, transform_indices = @transform_1, window_bounds = array<i64: 128, 128>}, {pipeline_mode = #tpu.pipeline_mode<synchronous>, transform_indices = @transform_2, window_bounds = array<i64: 1, 128>}, {pipeline_mode = #tpu.pipeline_mode<synchronous>, transform_indices = @transform_3, window_bounds = array<i64: 9, 128, 128>}, {pipeline_mode = #tpu.pipeline_mode<synchronous>, transform_indices = @transform_4, window_bounds = array<i64: 1, 128>}, {pipeline_mode = #tpu.pipeline_mode<synchronous>, transform_indices = @transform_5, window_bounds = array<i64: 128, 128>}, {pipeline_mode = #tpu.pipeline_mode<synchronous>, transform_indices = @transform_6, window_bounds = array<i64: 1, 128>}, {transform_indices = @transform_7, window_bounds = array<i64: 1, 1, 128>}, {transform_indices = @transform_8, window_bounds = array<i64: 1, 1, 128>}]} {
    %c0 = arith.constant 0 : index
    %c0_0 = arith.constant 0 : index
    %c0_1 = arith.constant 0 : index
    %0 = vector.load %arg1[%c0, %c0_0, %c0_1] : memref<1x256x128xbf16, #tpu.memory_space<vmem>>, vector<1x256x128xbf16>
    %1 = vector.shape_cast %0 : vector<1x256x128xbf16> to vector<256x128xbf16>
    %c0_2 = arith.constant 0 : index
    %c0_3 = arith.constant 0 : index
    %2 = vector.load %arg2[%c0_2, %c0_3] : memref<128x128xbf16, #tpu.memory_space<vmem>>, vector<128x128xbf16>
    %cst = arith.constant dense<0.000000e+00> : vector<256x128xf32>
    %3 = tpu.matmul %1, %2, %cst {dimension_numbers = #tpu.dot_dimension_numbers<[1], [0], [0], [1], [0, 0, 1, 1], [], []>} : vector<256x128xbf16>, vector<128x128xbf16>, vector<256x128xf32> -> vector<256x128xf32>
    %c0_4 = arith.constant 0 : index
    %c0_5 = arith.constant 0 : index
    %4 = vector.load %arg3[%c0_4, %c0_5] : memref<1x128xf32, #tpu.memory_space<vmem>>, vector<1x128xf32>
    %5 = vector.broadcast %4 : vector<1x128xf32> to vector<256x128xf32>
    %6 = arith.addf %3, %5 : vector<256x128xf32>
    %cst_6 = arith.constant 0.000000e+00 : f32
    %7 = vector.broadcast %cst_6 : f32 to vector<256x128xf32>
    %8 = arith.maximumf %6, %7 : vector<256x128xf32>
    %9 = arith.truncf %8 : vector<256x128xf32> to vector<256x128xbf16>
    %10 = vector.shape_cast %9 : vector<256x128xbf16> to vector<1x32x8x128xbf16>
    %cst_7 = arith.constant 0.000000e+00 : bf16
    %11 = vector.broadcast %cst_7 : bf16 to vector<1x1x9x128xbf16>
    %cst_8 = arith.constant 0.000000e+00 : bf16
    %12 = vector.broadcast %cst_8 : bf16 to vector<1x9x1x128xbf16>
    %c0_9 = arith.constant 0 : index
    %c0_10 = arith.constant 0 : index
    %c0_11 = arith.constant 0 : index
    %c0_12 = arith.constant 0 : index
    %13 = vector.load %arg10[%c0_9, %c0_10, %c0_11, %c0_12] : memref<1x9x9x128xbf16, #tpu.memory_space<vmem>>, vector<1x1x9x128xbf16>
    tpu.vector_store %arg10[%c0_9, %c0_10, %c0_11, %c0_12], %11 {strides = array<i32>} : memref<1x9x9x128xbf16, #tpu.memory_space<vmem>>, vector<1x1x9x128xbf16>,
    %c0_13 = arith.constant 0 : index
    %c0_14 = arith.constant 0 : index
    %c0_15 = arith.constant 0 : index
    %c0_16 = arith.constant 0 : index
    %14 = vector.load %arg11[%c0_13, %c0_14, %c0_15, %c0_16] : memref<1x9x9x128xbf16, #tpu.memory_space<vmem>>, vector<1x1x9x128xbf16>
    tpu.vector_store %arg11[%c0_13, %c0_14, %c0_15, %c0_16], %11 {strides = array<i32>} : memref<1x9x9x128xbf16, #tpu.memory_space<vmem>>, vector<1x1x9x128xbf16>,
    %c0_17 = arith.constant 0 : index
    %c0_18 = arith.constant 0 : index
    %c0_19 = arith.constant 0 : index
    %c0_20 = arith.constant 0 : index
    %15 = vector.load %arg10[%c0_17, %c0_18, %c0_19, %c0_20] : memref<1x9x9x128xbf16, #tpu.memory_space<vmem>>, vector<1x9x1x128xbf16>
    tpu.vector_store %arg10[%c0_17, %c0_18, %c0_19, %c0_20], %12 {strides = array<i32>} : memref<1x9x9x128xbf16, #tpu.memory_space<vmem>>, vector<1x9x1x128xbf16>,
    %c0_21 = arith.constant 0 : index
    %c0_22 = arith.constant 0 : index
    %c0_23 = arith.constant 0 : index
    %c0_24 = arith.constant 0 : index
    %16 = vector.load %arg12[%c0_21, %c0_22, %c0_23, %c0_24] : memref<1x9x9x128xbf16, #tpu.memory_space<vmem>>, vector<1x9x1x128xbf16>
    tpu.vector_store %arg12[%c0_21, %c0_22, %c0_23, %c0_24], %12 {strides = array<i32>} : memref<1x9x9x128xbf16, #tpu.memory_space<vmem>>, vector<1x9x1x128xbf16>,
    %17 = vector.extract_strided_slice %10 {offsets = [0, 0, 0, 0], sizes = [1, 8, 8, 128], strides = [1, 1, 1, 1]} : vector<1x32x8x128xbf16> to vector<1x8x8x128xbf16>
    %c0_25 = arith.constant 0 : index
    %c1 = arith.constant 1 : index
    %c1_26 = arith.constant 1 : index
    %c0_27 = arith.constant 0 : index
    %18 = vector.load %arg10[%c0_25, %c1, %c1_26, %c0_27] : memref<1x9x9x128xbf16, #tpu.memory_space<vmem>>, vector<1x8x8x128xbf16>
    tpu.vector_store %arg10[%c0_25, %c1, %c1_26, %c0_27], %17 {strides = array<i32>} : memref<1x9x9x128xbf16, #tpu.memory_space<vmem>>, vector<1x8x8x128xbf16>,
    %19 = vector.extract_strided_slice %10 {offsets = [0, 8, 0, 0], sizes = [1, 8, 8, 128], strides = [1, 1, 1, 1]} : vector<1x32x8x128xbf16> to vector<1x8x8x128xbf16>
    %c0_28 = arith.constant 0 : index
    %c1_29 = arith.constant 1 : index
    %c0_30 = arith.constant 0 : index
    %c0_31 = arith.constant 0 : index
    %20 = vector.load %arg11[%c0_28, %c1_29, %c0_30, %c0_31] : memref<1x9x9x128xbf16, #tpu.memory_space<vmem>>, vector<1x8x8x128xbf16>
    tpu.vector_store %arg11[%c0_28, %c1_29, %c0_30, %c0_31], %19 {strides = array<i32>} : memref<1x9x9x128xbf16, #tpu.memory_space<vmem>>, vector<1x8x8x128xbf16>,
    %21 = vector.extract_strided_slice %10 {offsets = [0, 16, 0, 0], sizes = [1, 8, 8, 128], strides = [1, 1, 1, 1]} : vector<1x32x8x128xbf16> to vector<1x8x8x128xbf16>
    %c0_32 = arith.constant 0 : index
    %c0_33 = arith.constant 0 : index
    %c1_34 = arith.constant 1 : index
    %c0_35 = arith.constant 0 : index
    %22 = vector.load %arg12[%c0_32, %c0_33, %c1_34, %c0_35] : memref<1x9x9x128xbf16, #tpu.memory_space<vmem>>, vector<1x8x8x128xbf16>
    tpu.vector_store %arg12[%c0_32, %c0_33, %c1_34, %c0_35], %21 {strides = array<i32>} : memref<1x9x9x128xbf16, #tpu.memory_space<vmem>>, vector<1x8x8x128xbf16>,
    %23 = vector.extract_strided_slice %10 {offsets = [0, 24, 0, 0], sizes = [1, 8, 8, 128], strides = [1, 1, 1, 1]} : vector<1x32x8x128xbf16> to vector<1x8x8x128xbf16>
    %c0_36 = arith.constant 0 : index
    %c0_37 = arith.constant 0 : index
    %c0_38 = arith.constant 0 : index
    %c0_39 = arith.constant 0 : index
    %24 = vector.load %arg13[%c0_36, %c0_37, %c0_38, %c0_39] : memref<1x9x9x128xbf16, #tpu.memory_space<vmem>>, vector<1x8x8x128xbf16>
    tpu.vector_store %arg13[%c0_36, %c0_37, %c0_38, %c0_39], %23 {strides = array<i32>} : memref<1x9x9x128xbf16, #tpu.memory_space<vmem>>, vector<1x8x8x128xbf16>,
    %cst_40 = arith.constant 0.000000e+00 : f32
    %25 = vector.broadcast %cst_40 : f32 to vector<64x128xf32>
    %c0_41 = arith.constant 0 : index
    %c0_42 = arith.constant 0 : index
    %c0_43 = arith.constant 0 : index
    %c0_44 = arith.constant 0 : index
    %26 = vector.load %arg10[%c0_41, %c0_42, %c0_43, %c0_44] : memref<1x9x9x128xbf16, #tpu.memory_space<vmem>>, vector<1x8x8x128xbf16>
    %27 = vector.shape_cast %26 : vector<1x8x8x128xbf16> to vector<64x128xbf16>
    %c0_45 = arith.constant 0 : index
    %c0_46 = arith.constant 0 : index
    %c0_47 = arith.constant 0 : index
    %28 = vector.load %arg4[%c0_45, %c0_46, %c0_47] : memref<9x128x128xbf16, #tpu.memory_space<vmem>>, vector<1x128x128xbf16>
    %29 = vector.shape_cast %28 : vector<1x128x128xbf16> to vector<128x128xbf16>
    %cst_48 = arith.constant dense<0.000000e+00> : vector<64x128xf32>
    %30 = tpu.matmul %27, %29, %cst_48 {dimension_numbers = #tpu.dot_dimension_numbers<[1], [0], [0], [1], [0, 0, 1, 1], [], []>} : vector<64x128xbf16>, vector<128x128xbf16>, vector<64x128xf32> -> vector<64x128xf32>
    %31 = arith.addf %25, %30 : vector<64x128xf32>
    %c0_49 = arith.constant 0 : index
    %c0_50 = arith.constant 0 : index
    %c0_51 = arith.constant 0 : index
    %c0_52 = arith.constant 0 : index
    %32 = vector.load %arg11[%c0_49, %c0_50, %c0_51, %c0_52] : memref<1x9x9x128xbf16, #tpu.memory_space<vmem>>, vector<1x8x8x128xbf16>
    %33 = vector.shape_cast %32 : vector<1x8x8x128xbf16> to vector<64x128xbf16>
    %c1_53 = arith.constant 1 : index
    %c0_54 = arith.constant 0 : index
    %c0_55 = arith.constant 0 : index
    %34 = vector.load %arg4[%c1_53, %c0_54, %c0_55] : memref<9x128x128xbf16, #tpu.memory_space<vmem>>, vector<1x128x128xbf16>
    %35 = vector.shape_cast %34 : vector<1x128x128xbf16> to vector<128x128xbf16>
    %cst_56 = arith.constant dense<0.000000e+00> : vector<64x128xf32>
    %36 = tpu.matmul %33, %35, %cst_56 {dimension_numbers = #tpu.dot_dimension_numbers<[1], [0], [0], [1], [0, 0, 1, 1], [], []>} : vector<64x128xbf16>, vector<128x128xbf16>, vector<64x128xf32> -> vector<64x128xf32>
    %37 = arith.addf %31, %36 : vector<64x128xf32>
    %c0_57 = arith.constant 0 : index
    %c0_58 = arith.constant 0 : index
    %c1_59 = arith.constant 1 : index
    %c0_60 = arith.constant 0 : index
    %38 = vector.load %arg10[%c0_57, %c0_58, %c1_59, %c0_60] : memref<1x9x9x128xbf16, #tpu.memory_space<vmem>>, vector<1x8x8x128xbf16>
    %39 = vector.shape_cast %38 : vector<1x8x8x128xbf16> to vector<64x128xbf16>
    %c2 = arith.constant 2 : index
    %c0_61 = arith.constant 0 : index
    %c0_62 = arith.constant 0 : index
    %40 = vector.load %arg4[%c2, %c0_61, %c0_62] : memref<9x128x128xbf16, #tpu.memory_space<vmem>>, vector<1x128x128xbf16>
    %41 = vector.shape_cast %40 : vector<1x128x128xbf16> to vector<128x128xbf16>
    %cst_63 = arith.constant dense<0.000000e+00> : vector<64x128xf32>
    %42 = tpu.matmul %39, %41, %cst_63 {dimension_numbers = #tpu.dot_dimension_numbers<[1], [0], [0], [1], [0, 0, 1, 1], [], []>} : vector<64x128xbf16>, vector<128x128xbf16>, vector<64x128xf32> -> vector<64x128xf32>
    %43 = arith.addf %37, %42 : vector<64x128xf32>
    %c0_64 = arith.constant 0 : index
    %c0_65 = arith.constant 0 : index
    %c0_66 = arith.constant 0 : index
    %c0_67 = arith.constant 0 : index
    %44 = vector.load %arg12[%c0_64, %c0_65, %c0_66, %c0_67] : memref<1x9x9x128xbf16, #tpu.memory_space<vmem>>, vector<1x8x8x128xbf16>
    %45 = vector.shape_cast %44 : vector<1x8x8x128xbf16> to vector<64x128xbf16>
    %c3 = arith.constant 3 : index
    %c0_68 = arith.constant 0 : index
    %c0_69 = arith.constant 0 : index
    %46 = vector.load %arg4[%c3, %c0_68, %c0_69] : memref<9x128x128xbf16, #tpu.memory_space<vmem>>, vector<1x128x128xbf16>
    %47 = vector.shape_cast %46 : vector<1x128x128xbf16> to vector<128x128xbf16>
    %cst_70 = arith.constant dense<0.000000e+00> : vector<64x128xf32>
    %48 = tpu.matmul %45, %47, %cst_70 {dimension_numbers = #tpu.dot_dimension_numbers<[1], [0], [0], [1], [0, 0, 1, 1], [], []>} : vector<64x128xbf16>, vector<128x128xbf16>, vector<64x128xf32> -> vector<64x128xf32>
    %49 = arith.addf %43, %48 : vector<64x128xf32>
    %c0_71 = arith.constant 0 : index
    %c0_72 = arith.constant 0 : index
    %c0_73 = arith.constant 0 : index
    %c0_74 = arith.constant 0 : index
    %50 = vector.load %arg13[%c0_71, %c0_72, %c0_73, %c0_74] : memref<1x9x9x128xbf16, #tpu.memory_space<vmem>>, vector<1x8x8x128xbf16>
    %51 = vector.shape_cast %50 : vector<1x8x8x128xbf16> to vector<64x128xbf16>
    %c4 = arith.constant 4 : index
    %c0_75 = arith.constant 0 : index
    %c0_76 = arith.constant 0 : index
    %52 = vector.load %arg4[%c4, %c0_75, %c0_76] : memref<9x128x128xbf16, #tpu.memory_space<vmem>>, vector<1x128x128xbf16>
    %53 = vector.shape_cast %52 : vector<1x128x128xbf16> to vector<128x128xbf16>
    %cst_77 = arith.constant dense<0.000000e+00> : vector<64x128xf32>
    %54 = tpu.matmul %51, %53, %cst_77 {dimension_numbers = #tpu.dot_dimension_numbers<[1], [0], [0], [1], [0, 0, 1, 1], [], []>} : vector<64x128xbf16>, vector<128x128xbf16>, vector<64x128xf32> -> vector<64x128xf32>
    %55 = arith.addf %49, %54 : vector<64x128xf32>
    %c0_78 = arith.constant 0 : index
    %c0_79 = arith.constant 0 : index
    %c1_80 = arith.constant 1 : index
    %c0_81 = arith.constant 0 : index
    %56 = vector.load %arg12[%c0_78, %c0_79, %c1_80, %c0_81] : memref<1x9x9x128xbf16, #tpu.memory_space<vmem>>, vector<1x8x8x128xbf16>
    %57 = vector.shape_cast %56 : vector<1x8x8x128xbf16> to vector<64x128xbf16>
    %c5 = arith.constant 5 : index
    %c0_82 = arith.constant 0 : index
    %c0_83 = arith.constant 0 : index
    %58 = vector.load %arg4[%c5, %c0_82, %c0_83] : memref<9x128x128xbf16, #tpu.memory_space<vmem>>, vector<1x128x128xbf16>
    %59 = vector.shape_cast %58 : vector<1x128x128xbf16> to vector<128x128xbf16>
    %cst_84 = arith.constant dense<0.000000e+00> : vector<64x128xf32>
    %60 = tpu.matmul %57, %59, %cst_84 {dimension_numbers = #tpu.dot_dimension_numbers<[1], [0], [0], [1], [0, 0, 1, 1], [], []>} : vector<64x128xbf16>, vector<128x128xbf16>, vector<64x128xf32> -> vector<64x128xf32>
    %61 = arith.addf %55, %60 : vector<64x128xf32>
    %c0_85 = arith.constant 0 : index
    %c1_86 = arith.constant 1 : index
    %c0_87 = arith.constant 0 : index
    %c0_88 = arith.constant 0 : index
    %62 = vector.load %arg10[%c0_85, %c1_86, %c0_87, %c0_88] : memref<1x9x9x128xbf16, #tpu.memory_space<vmem>>, vector<1x8x8x128xbf16>
    %63 = vector.shape_cast %62 : vector<1x8x8x128xbf16> to vector<64x128xbf16>
    %c6 = arith.constant 6 : index
    %c0_89 = arith.constant 0 : index
    %c0_90 = arith.constant 0 : index
    %64 = vector.load %arg4[%c6, %c0_89, %c0_90] : memref<9x128x128xbf16, #tpu.memory_space<vmem>>, vector<1x128x128xbf16>
    %65 = vector.shape_cast %64 : vector<1x128x128xbf16> to vector<128x128xbf16>
    %cst_91 = arith.constant dense<0.000000e+00> : vector<64x128xf32>
    %66 = tpu.matmul %63, %65, %cst_91 {dimension_numbers = #tpu.dot_dimension_numbers<[1], [0], [0], [1], [0, 0, 1, 1], [], []>} : vector<64x128xbf16>, vector<128x128xbf16>, vector<64x128xf32> -> vector<64x128xf32>
    %67 = arith.addf %61, %66 : vector<64x128xf32>
    %c0_92 = arith.constant 0 : index
    %c1_93 = arith.constant 1 : index
    %c0_94 = arith.constant 0 : index
    %c0_95 = arith.constant 0 : index
    %68 = vector.load %arg11[%c0_92, %c1_93, %c0_94, %c0_95] : memref<1x9x9x128xbf16, #tpu.memory_space<vmem>>, vector<1x8x8x128xbf16>
    %69 = vector.shape_cast %68 : vector<1x8x8x128xbf16> to vector<64x128xbf16>
    %c7 = arith.constant 7 : index
    %c0_96 = arith.constant 0 : index
    %c0_97 = arith.constant 0 : index
    %70 = vector.load %arg4[%c7, %c0_96, %c0_97] : memref<9x128x128xbf16, #tpu.memory_space<vmem>>, vector<1x128x128xbf16>
    %71 = vector.shape_cast %70 : vector<1x128x128xbf16> to vector<128x128xbf16>
    %cst_98 = arith.constant dense<0.000000e+00> : vector<64x128xf32>
    %72 = tpu.matmul %69, %71, %cst_98 {dimension_numbers = #tpu.dot_dimension_numbers<[1], [0], [0], [1], [0, 0, 1, 1], [], []>} : vector<64x128xbf16>, vector<128x128xbf16>, vector<64x128xf32> -> vector<64x128xf32>
    %73 = arith.addf %67, %72 : vector<64x128xf32>
    %c0_99 = arith.constant 0 : index
    %c1_100 = arith.constant 1 : index
    %c1_101 = arith.constant 1 : index
    %c0_102 = arith.constant 0 : index
    %74 = vector.load %arg10[%c0_99, %c1_100, %c1_101, %c0_102] : memref<1x9x9x128xbf16, #tpu.memory_space<vmem>>, vector<1x8x8x128xbf16>
    %75 = vector.shape_cast %74 : vector<1x8x8x128xbf16> to vector<64x128xbf16>
    %c8 = arith.constant 8 : index
    %c0_103 = arith.constant 0 : index
    %c0_104 = arith.constant 0 : index
    %76 = vector.load %arg4[%c8, %c0_103, %c0_104] : memref<9x128x128xbf16, #tpu.memory_space<vmem>>, vector<1x128x128xbf16>
    %77 = vector.shape_cast %76 : vector<1x128x128xbf16> to vector<128x128xbf16>
    %cst_105 = arith.constant dense<0.000000e+00> : vector<64x128xf32>
    %78 = tpu.matmul %75, %77, %cst_105 {dimension_numbers = #tpu.dot_dimension_numbers<[1], [0], [0], [1], [0, 0, 1, 1], [], []>} : vector<64x128xbf16>, vector<128x128xbf16>, vector<64x128xf32> -> vector<64x128xf32>
    %79 = arith.addf %73, %78 : vector<64x128xf32>
    %c0_106 = arith.constant 0 : index
    %c0_107 = arith.constant 0 : index
    %80 = vector.load %arg5[%c0_106, %c0_107] : memref<1x128xf32, #tpu.memory_space<vmem>>, vector<1x128xf32>
    %81 = vector.broadcast %80 : vector<1x128xf32> to vector<64x128xf32>
    %82 = arith.addf %79, %81 : vector<64x128xf32>
    %cst_108 = arith.constant 0.000000e+00 : f32
    %83 = vector.broadcast %cst_108 : f32 to vector<64x128xf32>
    %84 = arith.maximumf %82, %83 : vector<64x128xf32>
    %85 = vector.shape_cast %84 : vector<64x128xf32> to vector<1x64x128xf32>
    %cst_109 = arith.constant dense<0.000000e+00> : vector<1x128xf32>
    %86 = vector.multi_reduction <add>, %85, %cst_109 [1] : vector<1x64x128xf32> to vector<1x128xf32>
    %cst_110 = arith.constant 1.562500e-02 : f32
    %87 = vector.broadcast %cst_110 : f32 to vector<1x128xf32>
    %88 = arith.mulf %86, %87 : vector<1x128xf32>
    %89 = arith.truncf %88 : vector<1x128xf32> to vector<1x128xbf16>
    %c0_111 = arith.constant 0 : index
    %c0_112 = arith.constant 0 : index
    %90 = vector.load %arg6[%c0_111, %c0_112] : memref<128x128xbf16, #tpu.memory_space<vmem>>, vector<128x128xbf16>
    %cst_113 = arith.constant dense<0.000000e+00> : vector<1x128xf32>
    %91 = tpu.matmul %89, %90, %cst_113 {dimension_numbers = #tpu.dot_dimension_numbers<[1], [0], [0], [1], [0, 0, 1, 1], [], []>} : vector<1x128xbf16>, vector<128x128xbf16>, vector<1x128xf32> -> vector<1x128xf32>
    %c0_114 = arith.constant 0 : index
    %c0_115 = arith.constant 0 : index
    %92 = vector.load %arg7[%c0_114, %c0_115] : memref<1x128xf32, #tpu.memory_space<vmem>>, vector<1x128xf32>
    %93 = arith.addf %91, %92 : vector<1x128xf32>
    %94 = vector.shape_cast %93 : vector<1x128xf32> to vector<1x1x128xf32>
    %c0_116 = arith.constant 0 : index
    %c0_117 = arith.constant 0 : index
    %c0_118 = arith.constant 0 : index
    %95 = vector.load %arg8[%c0_116, %c0_117, %c0_118] : memref<1x1x128xf32, #tpu.memory_space<vmem>>, vector<1x1x128xf32>
    tpu.vector_store %arg8[%c0_116, %c0_117, %c0_118], %94 {strides = array<i32>} : memref<1x1x128xf32, #tpu.memory_space<vmem>>, vector<1x1x128xf32>,
    %96 = vector.shape_cast %88 : vector<1x128xf32> to vector<1x1x128xf32>
    %c0_119 = arith.constant 0 : index
    %c0_120 = arith.constant 0 : index
    %c0_121 = arith.constant 0 : index
    %97 = vector.load %arg9[%c0_119, %c0_120, %c0_121] : memref<1x1x128xf32, #tpu.memory_space<vmem>>, vector<1x1x128xf32>
    tpu.vector_store %arg9[%c0_119, %c0_120, %c0_121], %96 {strides = array<i32>} : memref<1x1x128xf32, #tpu.memory_space<vmem>>, vector<1x1x128xf32>,
    return
  }
  func.func @transform_0(%arg0: i32) -> (i32, i32, i32) {
    %c0_i32 = arith.constant 0 : i32
    %c0_i32_0 = arith.constant 0 : i32
    %c0_i32_1 = arith.constant 0 : i32
    return %arg0, %c0_i32, %c0_i32_0 : i32, i32, i32
  }
  func.func @transform_1(%arg0: i32) -> (i32, i32) {
    %c0_i32 = arith.constant 0 : i32
    %c0_i32_0 = arith.constant 0 : i32
    %c0_i32_1 = arith.constant 0 : i32
    return %c0_i32, %c0_i32_0 : i32, i32
  }
  func.func @transform_2(%arg0: i32) -> (i32, i32) {
    %c0_i32 = arith.constant 0 : i32
    %c0_i32_0 = arith.constant 0 : i32
    %c0_i32_1 = arith.constant 0 : i32
    return %c0_i32, %c0_i32_0 : i32, i32
  }
  func.func @transform_3(%arg0: i32) -> (i32, i32, i32) {
    %c0_i32 = arith.constant 0 : i32
    %c0_i32_0 = arith.constant 0 : i32
    %c0_i32_1 = arith.constant 0 : i32
    %c0_i32_2 = arith.constant 0 : i32
    return %c0_i32, %c0_i32_0, %c0_i32_1 : i32, i32, i32
  }
  func.func @transform_4(%arg0: i32) -> (i32, i32) {
    %c0_i32 = arith.constant 0 : i32
    %c0_i32_0 = arith.constant 0 : i32
    %c0_i32_1 = arith.constant 0 : i32
    return %c0_i32, %c0_i32_0 : i32, i32
  }
  func.func @transform_5(%arg0: i32) -> (i32, i32) {
    %c0_i32 = arith.constant 0 : i32
    %c0_i32_0 = arith.constant 0 : i32
    %c0_i32_1 = arith.constant 0 : i32
    return %c0_i32, %c0_i32_0 : i32, i32
  }
  func.func @transform_6(%arg0: i32) -> (i32, i32) {
    %c0_i32 = arith.constant 0 : i32
    %c0_i32_0 = arith.constant 0 : i32
    %c0_i32_1 = arith.constant 0 : i32
    return %c0_i32, %c0_i32_0 : i32, i32
  }
  func.func @transform_7(%arg0: i32) -> (i32, i32, i32) {
    %c0_i32 = arith.constant 0 : i32
    %c0_i32_0 = arith.constant 0 : i32
    %c0_i32_1 = arith.constant 0 : i32
    return %arg0, %c0_i32, %c0_i32_0 : i32, i32, i32
  }
  func.func @transform_8(%arg0: i32) -> (i32, i32, i32) {
    %c0_i32 = arith.constant 0 : i32
    %c0_i32_0 = arith.constant 0 : i32
    %c0_i32_1 = arith.constant 0 : i32
    return %arg0, %c0_i32, %c0_i32_0 : i32, i32, i32
  }
}

</mosaic_0001>

<bundles_post_ra>
// kernel: tpu_custom_call.1
= control target key start
LH: loop header
LB: loop body
LE: loop exit
PB: predicated region body
PF: predicated region fallthrough
CT: control target
= control target key end

     0   :  { %s4373_s0 = inlined_call_operand.hbm [shape: bf16[2,256,128], index: 0, kind: input, shape index: {}]   ;;  %s4374_s1 = inlined_call_operand.hbm [shape: bf16[128,128], index: 1, kind: input, shape index: {}]   ;;  %s4375_s2 = inlined_call_operand.vmem [shape: f32[1,128], index: 2, kind: input, shape index: {}]   ;;  %s4376_s3 = inlined_call_operand.hbm [shape: bf16[9,128,128], index: 3, kind: input, shape index: {}]   ;;  %s4377_s4 = inlined_call_operand.vmem [shape: f32[1,128], index: 4, kind: input, shape index: {}]   ;;  %s4378_s5 = inlined_call_operand.hbm [shape: bf16[128,128], index: 5, kind: input, shape index: {}]   ;;  %s4379_s6 = inlined_call_operand.vmem [shape: f32[1,128], index: 6, kind: input, shape index: {}]   ;;  %s4380_s7 = inlined_call_operand.hbm [shape: f32[2,1,128], index: 7, kind: output, shape index: {0}]   ;;  %s4381_s8 = inlined_call_operand.hbm [shape: f32[2,1,128], index: 8, kind: output, shape index: {1}]  }
   0x1   :  { %4384 = sst [smem:[#allocation22_spill]] %s4374_s1 }
   0x2   :  { %4385 = sst [smem:[#allocation23_spill]] %s4376_s3 }
   0x3   :  { %14 = vsyncpa [#allocation7], 0 }
   0x4   :  { %16 = vsyncpa [#allocation7 + $0x1], 0 }
   0x5   :  { %17 = vsyncpa [#allocation10], 0 }
   0x6   :  { %18 = vsyncpa [#allocation13], 0 }
   0x7   :  { %19 = vsyncpa [#allocation8], 0 }
   0x8   :  { %21 = vsyncpa [#allocation8 + $0x1], 0 }
   0x9   :  { %22 = vsyncpa [#allocation16], 0 }
   0xa   :  { %24 = vsyncpa [#allocation16 + $0x1], 0  ;;  %s3905_s27 = smov 0   ;;  %s3907_s28 = smov 0  }
   0xb   :  { %s3909_s29 = smov 0   ;;  %s3911_s30 = smov 0  }
   0xc LB: > { %s3926_s9 = sadd.s32 4294967295, %s3852_s30   ;;  %s2873_s10 = sadd.s32 4294967294, %s3852_s30   ;;  %s3852_s30 = sphi %s3911_s30, %s4406_s30   ;;  %s3848_s29 = sphi %s3909_s29, %s4405_s29   ;;  %s3844_s28 = sphi %s3907_s28, %s4404_s28   ;;  %s3840_s27 = sphi %s3905_s27, %s4403_s27  }
   0xd   : > { %p50_p0 = scmp.ne.s32.totalorder %s3844_s28, %s3840_s27  ;;  %p51_p1 = scmp.eq.s32.totalorder %s3926_s9, 0 }
   0xe   : > { %p200_p2 = scmp.eq.s32.totalorder %s3926_s9, 1  ;;  %p206_p3 = scmp.eq.s32.totalorder %s2873_s10, 1 }
   0xf   : > { %p3935_p4 = por %p51_p1, %p50_p0  ;;  %p2874_p5 = scmp.ge.s32.totalorder %s3852_s30, 1 }
  0x10   : > { %p3940_p6 = por %p206_p3, %p50_p0  ;;  %p239_p7 = scmp.lt.s32.totalorder %s3852_s30, 3 }
  0x11   : > { %s4388_s1 = sld [smem:[#allocation22_spill]]  ;;  %s3854_s17 = smov [#allocation9]  }
  0x12   : > { %p3948_p8 = pnand %p2874_p5, %p239_p7  ;;  %s252_s18 = sshll.u32 %s3854_s17, 4  ;;  %s253_s18 = int_to_ptr.vmem [resolvable:$true] %s252_s18 }
  0x13   : > { %s4391_s3 = sld [smem:[#allocation23_spill]]  ;;  %s4382_s23 = smov 64  }
  0x14   : > { %p3556_p9 = pneg %p3948_p8  ;;  %s4383_s24 = smov 4  }
  0x15   : > { %s3857_s25 = smov [#allocation11]   ;;  %s284_s14 = sshll.u32 %s4378_s5, 4  ;;  %s285_s14 = int_to_ptr.hbm [resolvable:$true] %s284_s14 }
  0x16   : > { %p3956_p10 = pnand %p3556_p9, %p51_p1  ;;  %s269_s26 = sshll.u32 %s3857_s25, 4  ;;  %s270_s26 = int_to_ptr.vmem [resolvable:$true] %s269_s26 }
  0x17   : > { %s250_s15 = sshll.u32 %s4388_s1, 4  ;;  %s37_s21 = sadd.s32 1, %s3848_s29  ;;  %s251_s15 = int_to_ptr.hbm [resolvable:$true] %s250_s15 }
  0x18   : > { %3559 = dma.hbm_to_vmem [thread:$0]  (!%p3956_p10), %s251_s15, 1024, %s253_s18, [#allocation10], %s4382_s23, %s4382_s23, %s4383_s24  }
  0x19   : > { %s267_s22 = sshll.u32 %s4391_s3, 4  ;;  %s3858_s15 = smov [#allocation12]   ;;  %s268_s22 = int_to_ptr.hbm [resolvable:$true] %s267_s22 }
  0x1a   : > { %3562 = dma.hbm_to_vmem [thread:$0]  (!%p3956_p10), %s268_s22, 9216, %s270_s26, [#allocation10], %s4382_s23, %s4382_s23, %s4383_s24  }
  0x1b   : > { %s286_s17 = sshll.u32 %s3858_s15, 4  ;;  %s3978_s18 = sadd.s32 1, %s3852_s30   ;;  %s287_s17 = int_to_ptr.vmem [resolvable:$true] %s286_s17 }
  0x1c   : > { %3565 = dma.hbm_to_vmem [thread:$0]  (!%p3956_p10), %s285_s14, 1024, %s287_s17, [#allocation13], %s4382_s23, %s4382_s23, %s4383_s24  }
  0x1d   : > { %s34_s20 = ssub.s32 %s3852_s30, %s3978_s18  ;;  %p44_p13 = scmp.ne.s32.totalorder %s3848_s29, %s3844_s28 }
  0x1e   : > { %p35_p12 = scmp.eq.s32.totalorder %s34_s20, 0  ;;  %p45_p0 = scmp.eq.s32.totalorder %s3852_s30, 0 }
  0x1f   : > { %p3996_p3 = por %p200_p2, %p44_p13  ;;  %p3580_p5 = scmp.lt.s32.totalorder %s3852_s30, 2 }
  0x20   : > { %s3992_s25 = scalar_select %p35_p12, %s3848_s29, %s37_s21  }
  0x21   : > { %s303_s26 = sand.u32 1, %s3848_s29   ;;  %s3401_s19 = sshll.u32 %s3852_s30, 7 }
  0x22   : > { %p46_p7 = por %p45_p0, %p44_p13  ;;  %s2879_s10 = sshll.u32 %s303_s26, 7 }
  0x23   : > { %s312_s14 = scalar_lea.hbm %s4373_s0, %s3401_s19  ;;  %s307_s20 = scalar_lea.vmem [#allocation6], %s2879_s10 }
  0x24   : > { %s313_s17 = sshll.u32 %s312_s14, 4  ;;  %s315_s23 = sshll.u32 %s307_s20, 4  ;;  %s314_s17 = int_to_ptr.hbm [resolvable:$true] %s313_s17  ;;  %s316_s23 = int_to_ptr.vmem [resolvable:$true] %s315_s23 }
  0x25   : > { %p4006_p9 = pnand %p3580_p5, %p46_p7  ;;  %s304_s24 = scalar_lea.sflag [#allocation7], %s303_s26 }
  0x26   : > { %s3716_s1 = sshra.s32 %s314_s17, 4  ;;  %s3723_s10 = scalar_lea.hbm %s4373_s0, 256  ;;  %s3717_s1 = int_to_ptr.hbm [resolvable:$true] %s3716_s1 }
  0x27   : > { %s3718_s3 = scalar_lea.hbm %s3717_s1, 128  ;;  %p3720_p10 = pneg %p4006_p9 }
  0x28   : > { %p3719_p2 = scmp.ne.s32.totalorder %s3717_s1, %s3718_s3  ;;  %p3724_p0 = scmp.lt.s32.totalorder %s3717_s1, %s4373_s0 }
  0x29   : > { %p3725_p5 = scmp.lt.s32.totalorder %s3723_s10, %s3718_s3 }
  0x2a   : > { %p3721_p12 = pnand %p3720_p10, %p3719_p2 }
  0x2b   : > { %p3726_p7 = por %p3725_p5, %p3724_p0 }
  0x2c   : > { %p3722_p13 = pneg %p3721_p12 }
  0x2e   : > { %p3727_p11 = pnand %p3726_p7, %p3722_p13 }
  0x30   : > { %3730 = shalt.err (!%p3727_p11)
}
  0x31   : > { %s4394_s26 = smov 4   ;;  %s4395_s20 = smov 64  }
  0x32   : > { %3569 = dma.hbm_to_vmem [thread:$0]  (!%p4006_p9), %s314_s17, 2048, %s316_s23, %s304_s24, %s4395_s20, %s4395_s20, %s4394_s26  }
  0x33   : > { %327 = sbr.rel (%p3948_p8) target bundleno = 847 (0x34f), region = 48  ;;  %s4026_s19 = sand.u32 (!%p3948_p8), 1, %s3844_s28  }
  0x34   : > { %s2883_s1 = sshll.u32 (!%p3948_p8), %s4026_s19, 7  ;;  %s330_s3 = scalar_lea.sflag (!%p3948_p8), [#allocation7], %s4026_s19 }
  0x35   : > { %s4030_s13 = scalar_lea.vmem (!%p3948_p8), [#allocation6], %s2883_s1 }
  0x38   : > { %3819 = dma.done.wait (%p3935_p4), %s330_s3, 2048  }
  0x39   : > { %3821 = vsyncadd (%p3935_p4), %s330_s3, 4294965248 }
  0x3a   : > { %3823 = dma.done.wait (%p51_p1), [#allocation10], 10240  }
  0x3b   : > { %3825 = vsyncadd (%p51_p1), [#allocation10], 4294957056 }
  0x3c   : > { %3827 = dma.done.wait (%p51_p1), [#allocation13], 1024  }
  0x3d   : > { %3829 = vsyncadd (%p51_p1), [#allocation13], 4294966272  ;;  %vm736_vm0 = vcmask 1040384   ;;  %vm737_vm1 = vsmask.f32 256  ;;  %v3425_v3 = vld [vmem:[#allocation9 + $0x38] sm:$0xff]  ;;  %s2746_s26 = scalar_lea.hbm %s4381_s8, %s3926_s9 }
  0x3e   : > { %vm4044_vm2 = vmand %vm736_vm0, %vm737_vm1  ;;  %v743_v1 = vld [vmem:[#allocation3 + $0x4] sm:$0x1]  ;;  %v797_v2 = vld [vmem:[#allocation4 + $0x40] sm:$0x1]  ;;  %582 = vmatpush.bf16.msra.mxu0 %v3425_v3  ;;  %3530 = vmatpush.bf16.msra.mxu2 %v3425_v3  ;;  %v3859_v28 = vmov 0   ;;  %vm881_vm3 = vcmask 1043456  }
  0x3f   : > { %v744_v4 = vsel %vm4044_vm2, 0, %v743_v1  ;;  %v798_v5 = vsel %vm4044_vm2, 0, %v797_v2  ;;  %v3424_v6 = vld [vmem:[#allocation9 + $0x30] sm:$0xff]  ;;  %v3423_v7 = vld [vmem:[#allocation9 + $0x28] sm:$0xff]  ;;  %v3422_v8 = vld [vmem:[#allocation9 + $0x20] sm:$0xff]  ;;  %s384_s10 = scalar_lea.vmem [#allocation15], %s4026_s19 }
  0x40   : > { %745 = vst [vmem:[#allocation3 + $0x4] sm:$0x1] %v744_v4  ;;  %v3421_v9 = vld [vmem:[#allocation9 + $0x18] sm:$0xff]  ;;  %v3420_v10 = vld [vmem:[#allocation9 + $0x10] sm:$0xff]  ;;  %v3419_v11 = vld [vmem:[#allocation9 + $0x8] sm:$0xff]  ;;  %s2748_s20 = sshll.u32 %s384_s10, 4  ;;  %s2749_s20 = int_to_ptr.vmem [resolvable:$true] %s2748_s20 }
  0x41   : > { %799 = vst [vmem:[#allocation4 + $0x40] sm:$0x1] %v798_v5  ;;  %v3418_v12 = vld [vmem:[#allocation9] sm:$0xff]  ;;  %v3403_v14 = vld [vmem:[%s4030_s13 + $0x8] sm:$0xff]  ;;  %v3404_v15 = vld [vmem:[%s4030_s13 + $0x10] sm:$0xff]  ;;  %s2750_s1 = sshll.u32 %s2746_s26, 4  ;;  %s2751_s1 = int_to_ptr.hbm [resolvable:$true] %s2750_s1 }
  0x42   : > { %583 = vmatpush.bf16.msra.mxu0 %v3424_v6  ;;  %3531 = vmatpush.bf16.msra.mxu2 %v3424_v6  ;;  %v3402_v13 = vld [vmem:[%s4030_s13] sm:$0xff]  ;;  %v3405_v16 = vld [vmem:[%s4030_s13 + $0x18] sm:$0xff]  ;;  %v3407_v18 = vld [vmem:[%s4030_s13 + $0x28] sm:$0xff]  ;;  %735 = vst [vmem:[#allocation2] sm:$0xf] %v3859_v28  ;;  %s2725_s3 = scalar_lea.sflag [#allocation16], %s4026_s19 }
  0x43   : > { %v3406_v17 = vld [vmem:[%s4030_s13 + $0x20] sm:$0xff]  ;;  %v3416_v19 = vld [vmem:[%s4030_s13 + $0x70] sm:$0xff]  ;;  %v3437_v20 = vld [vmem:[#allocation11 + $0x38] sm:$0xff]  ;;  %742 = vst [vmem:[#allocation3] sm:$0xf] %v3859_v28  ;;  %s3766_s24 = scalar_lea.hbm %s4381_s8, 2 }
  0x44   : > { %v3436_v21 = vld [vmem:[#allocation11 + $0x30] sm:$0xff]  ;;  %v3435_v23 = vld [vmem:[#allocation11 + $0x28] sm:$0xff]  ;;  %v3457_v25 = vld [vmem:[#allocation11 + $0xb8] sm:$0xff]  ;;  %vm882_vm4 = vsmask.f32 7938 }
  0x45   : > { %v3408_v22 = vld [vmem:[%s4030_s13 + $0x30] sm:$0xff]  ;;  %v749_v24 = vld [vmem:[#allocation2 + $0x8] sm:$0x1]  ;;  %v3434_v27 = vld [vmem:[#allocation11 + $0x20] sm:$0xff]  ;;  %1540 = vmatpush.bf16.msra.mxu3 %v3457_v25  ;;  %vm1344_vm6 = vsmask.f32 3328 }
  0x46   : > { %584 = vmatpush.bf16.msra.mxu0 %v3423_v7  ;;  %3532 = vmatpush.bf16.msra.mxu2 %v3423_v7  ;;  %v750_v26 = vsel %vm4044_vm2, 0, %v749_v24  ;;  %v3417_v29 = vld [vmem:[%s4030_s13 + $0x78] sm:$0xff]  ;;  %v3456_v30 = vld [vmem:[#allocation11 + $0xb0] sm:$0xff]  ;;  %v3455_v32 = vld [vmem:[#allocation11 + $0xa8] sm:$0xff]  ;;  %vm1345_vm7 = vsmask.f32 7440 }
  0x47   : > { %751 = vst [vmem:[#allocation2 + $0x8] sm:$0x1] %v750_v26  ;;  %v3433_v31 = vld [vmem:[#allocation11 + $0x18] sm:$0xff]  ;;  %v752_v33 = vld [vmem:[#allocation2 + $0x10] sm:$0x1]  ;;  %v3454_v39 = vld [vmem:[#allocation11 + $0xa0] sm:$0xff] }
  0x48   : > { %v3432_v34 = vld [vmem:[#allocation11 + $0x10] sm:$0xff]  ;;  %v753_v36 = vsel %vm4044_vm2, 0, %v752_v33  ;;  %v3409_v38 = vld [vmem:[%s4030_s13 + $0x38] sm:$0xff]  ;;  %v3431_v40 = vld [vmem:[#allocation11 + $0x8] sm:$0xff] }
  0x49   : > { %1541 = vmatpush.bf16.msra.mxu3 %v3456_v30  ;;  %v746_v35 = vld [vmem:[#allocation2] sm:$0x1]  ;;  %754 = vst [vmem:[#allocation2 + $0x10] sm:$0x1] %v753_v36  ;;  %v739_v41 = vld [vmem:[#allocation2 + $0x4] sm:$0x1]  ;;  %vm4084_vm5 = vmand %vm881_vm3, %vm882_vm4 }
  0x4a   : > { %585 = vmatpush.bf16.msra.mxu0 %v3422_v8  ;;  %3533 = vmatpush.bf16.msra.mxu2 %v3422_v8  ;;  %v747_v37 = vsel %vm4044_vm2, 0, %v746_v35  ;;  %v740_v42 = vsel %vm4044_vm2, 0, %v739_v41  ;;  %v3453_v43 = vld [vmem:[#allocation11 + $0x98] sm:$0xff]  ;;  %v3430_v45 = vld [vmem:[#allocation11] sm:$0xff]  ;;  %v3452_v47 = vld [vmem:[#allocation11 + $0x90] sm:$0xff] }
  0x4b   : > { %748 = vst [vmem:[#allocation2] sm:$0x1] %v747_v37  ;;  %v755_v44 = vld [vmem:[#allocation2 + $0x18] sm:$0x1]  ;;  %v3451_v48 = vld [vmem:[#allocation11 + $0x88] sm:$0xff]  ;;  %v3410_v52 = vld [vmem:[%s4030_s13 + $0x40] sm:$0xff] }
  0x4c   : > { %741 = vst [vmem:[#allocation2 + $0x4] sm:$0x1] %v740_v42  ;;  %v756_v46 = vsel %vm4044_vm2, 0, %v755_v44  ;;  %v758_v49 = vld [vmem:[#allocation2 + $0x20] sm:$0x1]  ;;  %vm4102_vm8 = vmor %vm1344_vm6, %vm1345_vm7 }
  0x4d   : > { %1542 = vmatpush.bf16.msra.mxu3 %v3455_v32  ;;  %757 = vst [vmem:[#allocation2 + $0x18] sm:$0x1] %v756_v46  ;;  %v4075_v50 = vld [vmem:[%s4375_s2] ss:$0 sm:$0xff]  ;;  %v759_v51 = vsel %vm4044_vm2, 0, %v758_v49 }
  0x4e   : > { %586 = vmatpush.bf16.msra.mxu0 %v3421_v9  ;;  %3534 = vmatpush.bf16.msra.mxu2 %v3421_v9  ;;  %760 = vst [vmem:[#allocation2 + $0x20] sm:$0x1] %v759_v51  ;;  %v3450_v53 = vld [vmem:[#allocation11 + $0x80] sm:$0xff]  ;;  %v761_v57 = vld [vmem:[#allocation2 + $0x28] sm:$0x1] }
  0x4f   : > { %v762_v59 = vsel %vm4044_vm2, 0, %v761_v57  ;;  %v884_v6 = vld [vmem:[#allocation2 + $0x8] sm:$0xf]  ;;  %v887_v7 = vld [vmem:[#allocation2 + $0xc] sm:$0x1]  ;;  %v3448_v57 = vld [vmem:[#allocation11 + $0x70] sm:$0xff] }
  0x50   : > { %763 = vst [vmem:[#allocation2 + $0x28] sm:$0x1] %v762_v59  ;;  %v890_v28 = vld [vmem:[#allocation2 + $0x10] sm:$0xf]  ;;  %v767_v35 = vld [vmem:[#allocation2 + $0x38] sm:$0x1] }
  0x51   : > { %1543 = vmatpush.bf16.msra.mxu3 %v3454_v39  ;;  %v899_v59 = vld [vmem:[#allocation2 + $0x1c] sm:$0x1] }
  0x52   : > { %587 = vmatpush.bf16.msra.mxu0 %v3420_v10  ;;  %3535 = vmatpush.bf16.msra.mxu2 %v3420_v10  ;;  %v1328_v60 = vld [vmem:[#allocation2] sm:$0xf] }
  0x53   : > { %v1348_v63 = vshrl.u32 %v1328_v60, 16  ;;  %v1351_v1 = vshll.u32 %v1328_v60, 16  ;;  %v3033_v33 = vld [vmem:[#allocation2] sm:$0xf] }
  0x55   : > { %1544 = vmatpush.bf16.msra.mxu3 %v3453_v43 }
  0x56   : > { %588 = vmatpush.bf16.msra.mxu0 %v3419_v11  ;;  %3536 = vmatpush.bf16.msra.mxu2 %v3419_v11  ;;  %v1329_v11 = vld [vmem:[#allocation2 + $0x4] sm:$0x1] }
  0x59   : > { %1545 = vmatpush.bf16.msra.mxu3 %v3452_v47 }
  0x5a   : > { %589 = vmatpush.bf16.msra.mxu0 %v3418_v12  ;;  %3537 = vmatpush.bf16.msra.mxu2 %v3418_v12  ;;  %v1350_v12 = vrot.slane %v1348_v63, 4 }
  0x5d   : > { %590 = vmatmul.bf16.vlgmr.msra.gmra.mxu0 %v3402_v13  ;;  %660 = vmatmul.bf16.vlgmr.msra.gmra.mxu2 %v3416_v19  ;;  %v1353_v13 = vrot.slane %v1351_v1, 5 }
  0x5e   : > { %1299 = vmatpush.bf16.msrb.mxu2 %v3437_v20  ;;  %1546 = vmatpush.bf16.msra.mxu3 %v3451_v48  ;;  %v3411_v20 = vld [vmem:[%s4030_s13 + $0x48] sm:$0xff]  ;;  %v768_v48 = vsel %vm4044_vm2, 0, %v767_v35  ;;  %v3445_v35 = vld [vmem:[#allocation11 + $0x58] sm:$0xff] }
  0x5f   : > { %v1354_v26 = vor.u32 %v1353_v13, %v1350_v12  ;;  %769 = vst [vmem:[#allocation2 + $0x38] sm:$0x1] %v768_v48 }
  0x61   : > { %v1355_v41 = vrot.slane %v1354_v26, 4 }
  0x62   : > { %1300 = vmatpush.bf16.msrb.mxu2 %v3436_v21  ;;  %1547 = vmatpush.bf16.msra.mxu3 %v3450_v53  ;;  %v1357_v21 = vshll.u32 %v1329_v11, 16 }
  0x66   : > { %1301 = vmatpush.bf16.msrb.mxu2 %v3435_v23 }
  0x6a   : > { %1302 = vmatpush.bf16.msrb.mxu2 %v3434_v27  ;;  %v3449_v27 = vld [vmem:[#allocation11 + $0x78] sm:$0xff] }
  0x6b   : > { %1198 = vmatpush.bf16.msra.mxu1 %v3449_v27 }
  0x6d   : > { %595 = vmatmul.bf16.gmra.mxu0 %v3403_v14  ;;  %665 = vmatmul.bf16.gmra.mxu2 %v3417_v29  ;;  %v764_v14 = vld [vmem:[#allocation2 + $0x30] sm:$0x1]  ;;  %v893_v29 = vld [vmem:[#allocation2 + $0x14] sm:$0x1] }
  0x6e   : > { %1303 = vmatpush.bf16.msrb.mxu2 %v3433_v31 }
  0x6f   : > { %1199 = vmatpush.bf16.msra.mxu1 %v3448_v57 }
  0x72   : > { %1304 = vmatpush.bf16.msrb.mxu2 %v3432_v34  ;;  %v1359_v34 = vrot.slane %v1357_v21, 5  ;;  %v770_v21 = vld [vmem:[#allocation2 + $0x40] sm:$0x1] }
  0x73   : > { %v771_v27 = vsel %vm4044_vm2, 0, %v770_v21  ;;  %v3442_v21 = vld [vmem:[#allocation11 + $0x40] sm:$0xff] }
  0x74   : > { %v1360_v60 = vsel %vm4102_vm8, %v1355_v41, %v1359_v34  ;;  %772 = vst [vmem:[#allocation2 + $0x40] sm:$0x1] %v771_v27  ;;  %v917_v27 = vld [vmem:[#allocation2 + $0x34] sm:$0x1] }
  0x76   : > { %1305 = vmatpush.bf16.msrb.mxu2 %v3431_v40 }
  0x7a   : > { %1306 = vmatpush.bf16.msrb.mxu2 %v3430_v45 }
  0x7d   : > { %600 = vmatmul.bf16.gmra.mxu0 %v3404_v15 }
  0x8d   : > { %605 = vmatmul.bf16.gmra.mxu0 %v3405_v16 }
  0x9d   : > { %610 = vmatmul.bf16.gmra.mxu0 %v3406_v17 }
  0xad   : > { %615 = vmatmul.bf16.gmra.mxu0 %v3407_v18  ;;  %v765_v18 = vsel %vm4044_vm2, 0, %v764_v14 }
  0xae   : > { %766 = vst [vmem:[#allocation2 + $0x30] sm:$0x1] %v765_v18 }
  0xbd   : > { %620 = vmatmul.bf16.gmra.mxu0 %v3408_v22 }
  0xcd   : > { %625 = vmatmul.bf16.gmra.mxu0 %v3409_v38 }
  0xda   : > { %v591_v54 = vpop.f32.mrf.mxu0 }
  0xdb   : > { %v592_v55 = vadd.f32 %v4075_v50, %v591_v54 }
  0xdd   : > { %v671_v56 = vmax.f32 %v592_v55, 0.0  ;;  %630 = vmatmul.bf16.gmra.mxu0 %v3410_v52 }
  0xdf   : > { %v703_v58 = vpack.c.bf16 %v671_v56, %v671_v56 }
  0xe1   : > { %v801_v61 = vshrl.u32 %v703_v58, 16  ;;  %v804_v3 = vshll.u32 %v703_v58, 16  ;;  %v896_v58 = vld [vmem:[#allocation2 + $0x18] sm:$0xf] }
  0xe2   : > { %v593_v62 = vpop.f32.mrf.mxu0 }
  0xe3   : > { %v803_v2 = vrot.slane %v801_v61, 7  ;;  %v594_v4 = vadd.f32 %v4075_v50, %v593_v62 }
  0xe5   : > { %v806_v8 = vor.u32 %v804_v3, %v803_v2  ;;  %v807_v9 = vrot.slane %v803_v2, 4  ;;  %v672_v10 = vmax.f32 %v594_v4, 0.0  ;;  %v3447_v2 = vld [vmem:[#allocation11 + $0x68] sm:$0xff] }
  0xe6   : > { %1200 = vmatpush.bf16.msra.mxu1 %v3447_v2 }
  0xe7   : > { %v885_v15 = vsel %vm4084_vm5, %v806_v8, %v884_v6  ;;  %v888_v16 = vsel %vm4044_vm2, %v807_v9, %v887_v7  ;;  %v704_v17 = vpack.c.bf16 %v672_v10, %v672_v10  ;;  %v1476_v9 = vunpack.c.l.b16 %v1360_v60 }
  0xe8   : > { %886 = vst [vmem:[#allocation2 + $0x8] sm:$0xf] %v885_v15  ;;  %v3412_v15 = vld [vmem:[%s4030_s13 + $0x50] sm:$0xff] }
  0xe9   : > { %889 = vst [vmem:[#allocation2 + $0xc] sm:$0x1] %v888_v16  ;;  %v809_v19 = vshrl.u32 %v704_v17, 16  ;;  %v812_v24 = vshll.u32 %v704_v17, 16 }
  0xea   : > { %v596_v22 = vpop.f32.mrf.mxu0 }
  0xeb   : > { %v811_v23 = vrot.slane %v809_v19, 7  ;;  %v597_v25 = vadd.f32 %v4075_v50, %v596_v22  ;;  %v3446_v22 = vld [vmem:[#allocation11 + $0x60] sm:$0xff] }
  0xec   : > { %1201 = vmatpush.bf16.msra.mxu1 %v3446_v22 }
  0xed   : > { %v814_v30 = vor.u32 %v812_v24, %v811_v23  ;;  %v815_v31 = vrot.slane %v811_v23, 4  ;;  %v673_v32 = vmax.f32 %v597_v25, 0.0  ;;  %635 = vmatmul.bf16.gmra.mxu0 %v3411_v20  ;;  %v902_v24 = vld [vmem:[#allocation2 + $0x20] sm:$0xf] }
  0xef   : > { %v891_v36 = vsel %vm4084_vm5, %v814_v30, %v890_v28  ;;  %v894_v37 = vsel %vm4044_vm2, %v815_v31, %v893_v29  ;;  %v705_v38 = vpack.c.bf16 %v673_v32, %v673_v32  ;;  %v3426_v39 = vld [vmem:[#allocation2 + $0x4] sm:$0xf0]  ;;  %v905_v28 = vld [vmem:[#allocation2 + $0x24] sm:$0x1] }
  0xf0   : > { %v1330_v40 = vld [vmem:[#allocation2 + $0x8] sm:$0xf]  ;;  %892 = vst [vmem:[#allocation2 + $0x10] sm:$0xf] %v891_v36  ;;  %v3034_v42 = vor.u32 %v3426_v39, %v3033_v33  ;;  %v1331_v43 = vld [vmem:[#allocation2 + $0xc] sm:$0x1]  ;;  %1202 = vmatpush.bf16.msra.mxu1 %v3445_v35 }
  0xf1   : > { %v1362_v44 = vshrl.u32 %v1330_v40, 16  ;;  %v1365_v45 = vshll.u32 %v1330_v40, 16  ;;  %895 = vst [vmem:[#allocation2 + $0x14] sm:$0x1] %v894_v37  ;;  %v817_v46 = vshrl.u32 %v705_v38, 16  ;;  %v1371_v53 = vshll.u32 %v1331_v43, 16 }
  0xf2   : > { %v598_v49 = vpop.f32.mrf.mxu0  ;;  %1307 = vmatmul.bf16.vlgmr.msrb.gmra.mxu2 %v3034_v42  ;;  %v820_v55 = vshll.u32 %v705_v38, 16 }
  0xf3   : > { %v1364_v51 = vrot.slane %v1362_v44, 4  ;;  %v1367_v52 = vrot.slane %v1365_v45, 5  ;;  %v819_v54 = vrot.slane %v817_v46, 7  ;;  %v599_v56 = vadd.f32 %v4075_v50, %v598_v49 }
  0xf4   : > { %v1373_v4 = vrot.slane %v1371_v53, 5 }
  0xf5   : > { %v1368_v61 = vor.u32 %v1367_v52, %v1364_v51  ;;  %v822_v62 = vor.u32 %v820_v55, %v819_v54  ;;  %v823_v63 = vrot.slane %v819_v54, 4  ;;  %v674_v1 = vmax.f32 %v599_v56, 0.0  ;;  %v3444_v54 = vld [vmem:[#allocation11 + $0x50] sm:$0xff] }
  0xf6   : > { %1203 = vmatpush.bf16.msra.mxu1 %v3444_v54 }
  0xf7   : > { %v1369_v3 = vrot.slane %v1368_v61, 4  ;;  %v897_v6 = vsel %vm4084_vm5, %v822_v62, %v896_v58  ;;  %v900_v7 = vsel %vm4044_vm2, %v823_v63, %v899_v59  ;;  %v706_v8 = vpack.c.bf16 %v674_v1, %v674_v1  ;;  %v1332_v10 = vld [vmem:[#allocation2 + $0x10] sm:$0xf]  ;;  %v908_v58 = vld [vmem:[#allocation2 + $0x28] sm:$0xf] }
  0xf8   : > { %898 = vst [vmem:[#allocation2 + $0x18] sm:$0xf] %v897_v6  ;;  %v1376_v12 = vshrl.u32 %v1332_v10, 16  ;;  %v1379_v13 = vshll.u32 %v1332_v10, 16  ;;  %v1333_v29 = vld [vmem:[#allocation2 + $0x14] sm:$0x1] }
  0xf9   : > { %v1374_v11 = vsel %vm4102_vm8, %v1369_v3, %v1373_v4  ;;  %901 = vst [vmem:[#allocation2 + $0x1c] sm:$0x1] %v900_v7  ;;  %v825_v14 = vshrl.u32 %v706_v8, 16  ;;  %v828_v17 = vshll.u32 %v706_v8, 16  ;;  %v3037_v33 = vld [vmem:[#allocation2 + $0x10] sm:$0xf] }
  0xfa   : > { %v1477_v16 = vunpack.c.l.b16 %v1374_v11  ;;  %v601_v18 = vpop.f32.mrf.mxu0  ;;  %v1378_v19 = vrot.slane %v1376_v12, 4  ;;  %v1381_v20 = vrot.slane %v1379_v13, 5  ;;  %v1385_v41 = vshll.u32 %v1333_v29, 16  ;;  %v911_v59 = vld [vmem:[#allocation2 + $0x2c] sm:$0x1] }
  0xfb   : > { %v827_v23 = vrot.slane %v825_v14, 7  ;;  %v602_v25 = vadd.f32 %v4075_v50, %v601_v18  ;;  %v3443_v6 = vld [vmem:[#allocation11 + $0x48] sm:$0xff] }
  0xfc   : > { %v1484_v26 = vpack.c.b16 %v1477_v16, %v1476_v9  ;;  %v1382_v34 = vor.u32 %v1381_v20, %v1378_v19  ;;  %v1387_v60 = vrot.slane %v1385_v41, 5  ;;  %1204 = vmatpush.bf16.msra.mxu1 %v3443_v6 }
  0xfd   : > { %v830_v30 = vor.u32 %v828_v17, %v827_v23  ;;  %v831_v31 = vrot.slane %v827_v23, 4  ;;  %v675_v32 = vmax.f32 %v602_v25, 0.0  ;;  %640 = vmatmul.bf16.gmra.mxu0 %v3412_v15  ;;  %v3413_v15 = vld [vmem:[%s4030_s13 + $0x58] sm:$0xff] }
  0xfe   : > { %1548 = vmatmul.bf16.vlgmr.msra.gmra.mxu3 %v1484_v26  ;;  %v1383_v49 = vrot.slane %v1382_v34, 4  ;;  %v914_v26 = vld [vmem:[#allocation2 + $0x30] sm:$0xf] }
  0xff   : > { %v903_v36 = vsel %vm4084_vm5, %v830_v30, %v902_v24  ;;  %v906_v37 = vsel %vm4044_vm2, %v831_v31, %v905_v28  ;;  %v707_v38 = vpack.c.bf16 %v675_v32, %v675_v32  ;;  %v3427_v39 = vld [vmem:[#allocation2 + $0x14] sm:$0xf0] }
 0x100   : > { %v1334_v40 = vld [vmem:[#allocation2 + $0x18] sm:$0xf]  ;;  %904 = vst [vmem:[#allocation2 + $0x20] sm:$0xf] %v903_v36  ;;  %v3038_v42 = vor.u32 %v3427_v39, %v3037_v33  ;;  %v1335_v43 = vld [vmem:[#allocation2 + $0x1c] sm:$0x1]  ;;  %v1388_v2 = vsel %vm4102_vm8, %v1383_v49, %v1387_v60  ;;  %1205 = vmatpush.bf16.msra.mxu1 %v3442_v21 }
 0x101   : > { %v1390_v44 = vshrl.u32 %v1334_v40, 16  ;;  %v1393_v45 = vshll.u32 %v1334_v40, 16  ;;  %907 = vst [vmem:[#allocation2 + $0x24] sm:$0x1] %v906_v37  ;;  %v833_v46 = vshrl.u32 %v707_v38, 16  ;;  %v1399_v53 = vshll.u32 %v1335_v43, 16 }
 0x102   : > { %v603_v48 = vpop.f32.mrf.mxu0  ;;  %1312 = vmatmul.bf16.gmra.mxu2 %v3038_v42  ;;  %v836_v56 = vshll.u32 %v707_v38, 16  ;;  %v1478_v16 = vunpack.c.l.b16 %v1388_v2  ;;  %v926_v21 = vld [vmem:[#allocation2 + $0x40] sm:$0xf] }
 0x103   : > { %v1392_v51 = vrot.slane %v1390_v44, 4  ;;  %v1395_v52 = vrot.slane %v1393_v45, 5  ;;  %v835_v55 = vrot.slane %v833_v46, 7  ;;  %v604_v57 = vadd.f32 %v4075_v50, %v603_v48 }
 0x104   : > { %v1401_v4 = vrot.slane %v1399_v53, 5 }
 0x105   : > { %v1396_v61 = vor.u32 %v1395_v52, %v1392_v51  ;;  %v838_v62 = vor.u32 %v836_v56, %v835_v55  ;;  %v839_v63 = vrot.slane %v835_v55, 4  ;;  %v676_v1 = vmax.f32 %v604_v57, 0.0  ;;  %v920_v55 = vld [vmem:[#allocation2 + $0x38] sm:$0xf]  ;;  %v923_v56 = vld [vmem:[#allocation2 + $0x3c] sm:$0x1] }
 0x107   : > { %v1397_v3 = vrot.slane %v1396_v61, 4  ;;  %v909_v7 = vsel %vm4084_vm5, %v838_v62, %v908_v58  ;;  %v912_v8 = vsel %vm4044_vm2, %v839_v63, %v911_v59  ;;  %v708_v9 = vpack.c.bf16 %v676_v1, %v676_v1  ;;  %v1336_v10 = vld [vmem:[#allocation2 + $0x20] sm:$0xf] }
 0x108   : > { %910 = vst [vmem:[#allocation2 + $0x28] sm:$0xf] %v909_v7  ;;  %v1404_v12 = vshrl.u32 %v1336_v10, 16  ;;  %v1407_v13 = vshll.u32 %v1336_v10, 16  ;;  %v1337_v28 = vld [vmem:[#allocation2 + $0x24] sm:$0x1] }
 0x109   : > { %v1402_v11 = vsel %vm4102_vm8, %v1397_v3, %v1401_v4  ;;  %913 = vst [vmem:[#allocation2 + $0x2c] sm:$0x1] %v912_v8  ;;  %v841_v14 = vshrl.u32 %v708_v9, 16  ;;  %v844_v23 = vshll.u32 %v708_v9, 16  ;;  %v3041_v32 = vld [vmem:[#allocation2 + $0x20] sm:$0xf] }
 0x10a   : > { %v1479_v17 = vunpack.c.l.b16 %v1402_v11  ;;  %v606_v18 = vpop.f32.mrf.mxu0  ;;  %v1406_v19 = vrot.slane %v1404_v12, 4  ;;  %v1409_v20 = vrot.slane %v1407_v13, 5  ;;  %v1413_v39 = vshll.u32 %v1337_v28, 16  ;;  %v3414_v11 = vld [vmem:[%s4030_s13 + $0x60] sm:$0xff] }
 0x10b   : > { %v843_v22 = vrot.slane %v841_v14, 7  ;;  %v607_v24 = vadd.f32 %v4075_v50, %v606_v18 }
 0x10c   : > { %v1485_v25 = vpack.c.b16 %v1479_v17, %v1478_v16  ;;  %v1410_v33 = vor.u32 %v1409_v20, %v1406_v19  ;;  %v1415_v57 = vrot.slane %v1413_v39, 5 }
 0x10d   : > { %v846_v29 = vor.u32 %v844_v23, %v843_v22  ;;  %v847_v30 = vrot.slane %v843_v22, 4  ;;  %v677_v31 = vmax.f32 %v607_v24, 0.0  ;;  %645 = vmatmul.bf16.gmra.mxu0 %v3413_v15  ;;  %v929_v22 = vld [vmem:[#allocation2 + $0x44] sm:$0x1] }
 0x10e   : > { %1553 = vmatmul.bf16.gmra.mxu3 %v1485_v25  ;;  %v1411_v46 = vrot.slane %v1410_v33, 4 }
 0x10f   : > { %v915_v34 = vsel %vm4084_vm5, %v846_v29, %v914_v26  ;;  %v918_v35 = vsel %vm4044_vm2, %v847_v30, %v917_v27  ;;  %v709_v36 = vpack.c.bf16 %v677_v31, %v677_v31  ;;  %v3428_v37 = vld [vmem:[#allocation2 + $0x24] sm:$0xf0] }
 0x110   : > { %v1338_v38 = vld [vmem:[#allocation2 + $0x28] sm:$0xf]  ;;  %916 = vst [vmem:[#allocation2 + $0x30] sm:$0xf] %v915_v34  ;;  %v3042_v40 = vor.u32 %v3428_v37, %v3041_v32  ;;  %v1339_v41 = vld [vmem:[#allocation2 + $0x2c] sm:$0x1]  ;;  %v1416_v62 = vsel %vm4102_vm8, %v1411_v46, %v1415_v57 }
 0x111   : > { %v1418_v42 = vshrl.u32 %v1338_v38, 16  ;;  %v1421_v43 = vshll.u32 %v1338_v38, 16  ;;  %919 = vst [vmem:[#allocation2 + $0x34] sm:$0x1] %v918_v35  ;;  %v849_v44 = vshrl.u32 %v709_v36, 16  ;;  %v1427_v51 = vshll.u32 %v1339_v41, 16 }
 0x112   : > { %v608_v45 = vpop.f32.mrf.mxu0  ;;  %1317 = vmatmul.bf16.gmra.mxu2 %v3042_v40  ;;  %v852_v53 = vshll.u32 %v709_v36, 16  ;;  %v1480_v12 = vunpack.c.l.b16 %v1416_v62  ;;  %v3415_v57 = vld [vmem:[%s4030_s13 + $0x68] sm:$0xff]  ;;  %s3760_s13 = sshra.s32 %s2751_s1, 4  ;;  %s3761_s13 = int_to_ptr.hbm [resolvable:$true] %s3760_s13 }
 0x113   : > { %v1420_v48 = vrot.slane %v1418_v42, 4  ;;  %v1423_v49 = vrot.slane %v1421_v43, 5  ;;  %v851_v52 = vrot.slane %v849_v44, 7  ;;  %v609_v54 = vadd.f32 %v4075_v50, %v608_v45  ;;  %s3762_s11 = scalar_lea.hbm %s3761_s13, 1  ;;  %p3767_p11 = scmp.lt.s32.totalorder %s3761_s13, %s4381_s8 }
 0x114   : > { %v1429_v1 = vrot.slane %v1427_v51, 5  ;;  %p3763_p1 = scmp.ne.s32.totalorder %s3761_s13, %s3762_s11  ;;  %p3768_p9 = scmp.lt.s32.totalorder %s3766_s24, %s3762_s11 }
 0x115   : > { %v1424_v58 = vor.u32 %v1423_v49, %v1420_v48  ;;  %v854_v59 = vor.u32 %v852_v53, %v851_v52  ;;  %v855_v60 = vrot.slane %v851_v52, 4  ;;  %v678_v61 = vmax.f32 %v609_v54, 0.0  ;;  %v2985_v54 = vld [vmem:[#allocation3] sm:$0xf] }
 0x116   : > { %p3764_p4 = pnand %p3763_p1, %p3996_p3  ;;  %p3769_p2 = por %p3768_p9, %p3767_p11 }
 0x117   : > { %v1425_v63 = vrot.slane %v1424_v58, 4  ;;  %v921_v2 = vsel %vm4084_vm5, %v854_v59, %v920_v55  ;;  %v924_v3 = vsel %vm4044_vm2, %v855_v60, %v923_v56  ;;  %v710_v4 = vpack.c.bf16 %v678_v61, %v678_v61  ;;  %v1340_v6 = vld [vmem:[#allocation2 + $0x30] sm:$0xf] }
 0x118   : > { %922 = vst [vmem:[#allocation2 + $0x38] sm:$0xf] %v921_v2  ;;  %v1432_v8 = vshrl.u32 %v1340_v6, 16  ;;  %v1435_v9 = vshll.u32 %v1340_v6, 16  ;;  %v1341_v23 = vld [vmem:[#allocation2 + $0x34] sm:$0x1]  ;;  %p3765_p8 = pneg %p3764_p4 }
 0x119   : > { %v1430_v7 = vsel %vm4102_vm8, %v1425_v63, %v1429_v1  ;;  %925 = vst [vmem:[#allocation2 + $0x3c] sm:$0x1] %v924_v3  ;;  %v857_v10 = vshrl.u32 %v710_v4, 16  ;;  %v860_v18 = vshll.u32 %v710_v4, 16  ;;  %v3045_v27 = vld [vmem:[#allocation2 + $0x30] sm:$0xf] }
 0x11a   : > { %v1481_v13 = vunpack.c.l.b16 %v1430_v7  ;;  %v611_v14 = vpop.f32.mrf.mxu0  ;;  %v1434_v15 = vrot.slane %v1432_v8, 4  ;;  %v1437_v16 = vrot.slane %v1435_v9, 5  ;;  %v1441_v34 = vshll.u32 %v1341_v23, 16  ;;  %p3770_p10 = pnand %p3769_p2, %p3765_p8 }
 0x11b   : > { %v859_v17 = vrot.slane %v857_v10, 7  ;;  %v612_v19 = vadd.f32 %v4075_v50, %v611_v14  ;;  %v661_v10 = vpop.f32.mrf.mxu2 }
 0x11c   : > { %v1486_v20 = vpack.c.b16 %v1481_v13, %v1480_v12  ;;  %v1438_v28 = vor.u32 %v1437_v16, %v1434_v15  ;;  %v1443_v45 = vrot.slane %v1441_v34, 5  ;;  %v662_v12 = vadd.f32 %v4075_v50, %v661_v10  ;;  %v3469_v16 = vld [vmem:[#allocation11 + $0xf8] sm:$0xff] }
 0x11d   : > { %v862_v24 = vor.u32 %v860_v18, %v859_v17  ;;  %v863_v25 = vrot.slane %v859_v17, 4  ;;  %v679_v26 = vmax.f32 %v612_v19, 0.0  ;;  %650 = vmatmul.bf16.gmra.mxu0 %v3414_v11  ;;  %1674 = vmatpush.bf16.msrb.mxu1 %v3469_v16  ;;  %v785_v16 = vld [vmem:[#allocation4 + $0x20] sm:$0x1] }
 0x11e   : > { %1558 = vmatmul.bf16.gmra.mxu3 %v1486_v20  ;;  %v1439_v40 = vrot.slane %v1438_v28, 4  ;;  %v699_v15 = vmax.f32 %v662_v12, 0.0  ;;  %v773_v20 = vld [vmem:[#allocation4] sm:$0x1]  ;;  %v3489_v28 = vld [vmem:[#allocation11 + $0x178] sm:$0xff] }
 0x11f   : > { %v927_v29 = vsel %vm4084_vm5, %v862_v24, %v926_v21  ;;  %v930_v30 = vsel %vm4044_vm2, %v863_v25, %v929_v22  ;;  %v711_v31 = vpack.c.bf16 %v679_v26, %v679_v26  ;;  %v3429_v32 = vld [vmem:[#allocation2 + $0x34] sm:$0xf0]  ;;  %v3468_v21 = vld [vmem:[#allocation11 + $0xf0] sm:$0xff]  ;;  %v774_v22 = vsel %vm4044_vm2, 0, %v773_v20  ;;  %v3467_v25 = vld [vmem:[#allocation11 + $0xe8] sm:$0xff]  ;;  %2054 = vmatpush.bf16.msrb.mxu3 %v3489_v28 }
 0x120   : > { %v1342_v33 = vld [vmem:[#allocation2 + $0x38] sm:$0xf]  ;;  %928 = vst [vmem:[#allocation2 + $0x40] sm:$0xf] %v927_v29  ;;  %v3046_v35 = vor.u32 %v3429_v32, %v3045_v27  ;;  %v1343_v36 = vld [vmem:[#allocation2 + $0x3c] sm:$0x1]  ;;  %v1444_v49 = vsel %vm4102_vm8, %v1439_v40, %v1443_v45  ;;  %v731_v18 = vpack.c.bf16 %v699_v15, %v699_v15 }
 0x121   : > { %v1446_v37 = vshrl.u32 %v1342_v33, 16  ;;  %v1449_v38 = vshll.u32 %v1342_v33, 16  ;;  %931 = vst [vmem:[#allocation2 + $0x44] sm:$0x1] %v930_v30  ;;  %v1455_v43 = vshll.u32 %v1343_v36, 16  ;;  %v1482_v58 = vunpack.c.l.b16 %v1444_v49  ;;  %1675 = vmatpush.bf16.msrb.mxu1 %v3468_v21  ;;  %v3487_v45 = vld [vmem:[#allocation11 + $0x168] sm:$0xff] }
 0x122   : > { %933 = vst [vmem:[#allocation3 + $0x8] sm:$0xf] %v711_v31  ;;  %v613_v39 = vpop.f32.mrf.mxu0  ;;  %1322 = vmatmul.bf16.gmra.mxu2 %v3046_v35  ;;  %v776_v30 = vld [vmem:[#allocation4 + $0x8] sm:$0x1]  ;;  %v3466_v31 = vld [vmem:[#allocation11 + $0xe0] sm:$0xff]  ;;  %v3464_v49 = vld [vmem:[#allocation11 + $0xd0] sm:$0xff] }
 0x123   : > { %v1448_v41 = vrot.slane %v1446_v37, 4  ;;  %v1451_v42 = vrot.slane %v1449_v38, 5  ;;  %v614_v44 = vadd.f32 %v4075_v50, %v613_v39  ;;  %v1457_v52 = vrot.slane %v1455_v43, 5  ;;  %1073 = vst [vmem:[#allocation5 + $0x20] sm:$0xf] %v731_v18  ;;  %v663_v26 = vpop.f32.mrf.mxu2  ;;  %v3488_v38 = vld [vmem:[#allocation11 + $0x170] sm:$0xff] }
 0x124   : > { %775 = vst [vmem:[#allocation4] sm:$0x1] %v774_v22  ;;  %v777_v34 = vsel %vm4044_vm2, 0, %v776_v30  ;;  %v664_v36 = vadd.f32 %v4075_v50, %v663_v26  ;;  %2055 = vmatpush.bf16.msrb.mxu3 %v3488_v38  ;;  %v3482_v21 = vld [vmem:[#allocation11 + $0x140] sm:$0xff]  ;;  %v1024_v26 = vld [vmem:[#allocation4 + $0x4] sm:$0x1] }
 0x125   : > { %v1452_v46 = vor.u32 %v1451_v42, %v1448_v41  ;;  %v680_v48 = vmax.f32 %v614_v44, 0.0  ;;  %1676 = vmatpush.bf16.msrb.mxu1 %v3467_v25  ;;  %778 = vst [vmem:[#allocation4 + $0x8] sm:$0x1] %v777_v34  ;;  %v3465_v41 = vld [vmem:[#allocation11 + $0xd8] sm:$0xff] }
 0x126   : > { %v700_v40 = vmax.f32 %v664_v36, 0.0 }
 0x127   : > { %v1453_v51 = vrot.slane %v1452_v46, 4  ;;  %v712_v53 = vpack.c.bf16 %v680_v48, %v680_v48  ;;  %v779_v48 = vld [vmem:[#allocation4 + $0x10] sm:$0x1] }
 0x128   : > { %v732_v43 = vpack.c.bf16 %v700_v40, %v700_v40  ;;  %2056 = vmatpush.bf16.msrb.mxu3 %v3487_v45 }
 0x129   : > { %v1458_v55 = vsel %vm4102_vm8, %v1453_v51, %v1457_v52  ;;  %934 = vst [vmem:[#allocation3 + $0x10] sm:$0xf] %v712_v53  ;;  %v3438_v56 = vld [vmem:[#allocation3 + $0x4] sm:$0xf0]  ;;  %1677 = vmatpush.bf16.msrb.mxu1 %v3466_v31  ;;  %v780_v51 = vsel %vm4044_vm2, 0, %v779_v48 }
 0x12a   : > { %v1483_v59 = vunpack.c.l.b16 %v1458_v55  ;;  %v616_v60 = vpop.f32.mrf.mxu0  ;;  %v2986_v61 = vor.u32 %v3438_v56, %v2985_v54  ;;  %1074 = vst [vmem:[#allocation5 + $0x28] sm:$0xf] %v732_v43  ;;  %v3486_v54 = vld [vmem:[#allocation11 + $0x160] sm:$0xff] }
 0x12b   : > { %v617_v62 = vadd.f32 %v4075_v50, %v616_v60  ;;  %v666_v44 = vpop.f32.mrf.mxu2  ;;  %781 = vst [vmem:[#allocation4 + $0x10] sm:$0x1] %v780_v51  ;;  %v3485_v60 = vld [vmem:[#allocation11 + $0x158] sm:$0xff]  ;;  %v1021_v25 = vld [vmem:[#allocation4] sm:$0xf] }
 0x12c   : > { %v1487_v63 = vpack.c.b16 %v1483_v59, %v1482_v58  ;;  %1206 = vmatmul.bf16.vlgmr.msra.gmra.mxu1 %v2986_v61  ;;  %v667_v52 = vadd.f32 %v4075_v50, %v666_v44  ;;  %2057 = vmatpush.bf16.msrb.mxu3 %v3486_v54  ;;  %v3479_v54 = vld [vmem:[#allocation11 + $0x128] sm:$0xff] }
 0x12d   : > { %v681_v1 = vmax.f32 %v617_v62, 0.0  ;;  %655 = vmatmul.bf16.gmra.mxu0 %v3415_v57  ;;  %1678 = vmatpush.bf16.msrb.mxu1 %v3465_v41  ;;  %v3463_v57 = vld [vmem:[#allocation11 + $0xc8] sm:$0xff]  ;;  %v1027_v41 = vld [vmem:[#allocation4 + $0x8] sm:$0xf] }
 0x12e   : > { %1563 = vmatmul.bf16.gmra.mxu3 %v1487_v63  ;;  %v701_v56 = vmax.f32 %v667_v52, 0.0  ;;  %v782_v62 = vld [vmem:[#allocation4 + $0x18] sm:$0x1]  ;;  %v3462_v63 = vld [vmem:[#allocation11 + $0xc0] sm:$0xff] }
 0x12f   : > { %v713_v2 = vpack.c.bf16 %v681_v1, %v681_v1 }
 0x130   : > { %v2989_v8 = vld [vmem:[#allocation3 + $0x10] sm:$0xf]  ;;  %v733_v59 = vpack.c.bf16 %v701_v56, %v701_v56  ;;  %2058 = vmatpush.bf16.msrb.mxu3 %v3485_v60  ;;  %v1036_v60 = vld [vmem:[#allocation4 + $0x14] sm:$0x1] }
 0x131   : > { %935 = vst [vmem:[#allocation3 + $0x18] sm:$0xf] %v713_v2  ;;  %1679 = vmatpush.bf16.msrb.mxu1 %v3464_v49 }
 0x132   : > { %v618_v3 = vpop.f32.mrf.mxu0  ;;  %1075 = vst [vmem:[#allocation5 + $0x30] sm:$0xf] %v733_v59 }
 0x133   : > { %v619_v4 = vadd.f32 %v4075_v50, %v618_v3  ;;  %v668_v3 = vpop.f32.mrf.mxu2 }
 0x135   : > { %v682_v6 = vmax.f32 %v619_v4, 0.0  ;;  %1680 = vmatpush.bf16.msrb.mxu1 %v3463_v57  ;;  %v783_v4 = vsel %vm4044_vm2, 0, %v782_v62  ;;  %v791_v57 = vld [vmem:[#allocation4 + $0x30] sm:$0x1] }
 0x136   : > { %784 = vst [vmem:[#allocation4 + $0x18] sm:$0x1] %v783_v4  ;;  %v792_v62 = vsel %vm4044_vm2, 0, %v791_v57 }
 0x137   : > { %v714_v7 = vpack.c.bf16 %v682_v6, %v682_v6  ;;  %793 = vst [vmem:[#allocation4 + $0x30] sm:$0x1] %v792_v62  ;;  %v3476_v62 = vld [vmem:[#allocation11 + $0x110] sm:$0xff] }
 0x138   : > { %v3439_v9 = vld [vmem:[#allocation3 + $0x14] sm:$0xf0] }
 0x139   : > { %936 = vst [vmem:[#allocation3 + $0x20] sm:$0xf] %v714_v7  ;;  %v2990_v11 = vor.u32 %v3439_v9, %v2989_v8  ;;  %v669_v7 = vadd.f32 %v4075_v50, %v668_v3  ;;  %1681 = vmatpush.bf16.msrb.mxu1 %v3462_v63  ;;  %v3484_v9 = vld [vmem:[#allocation11 + $0x150] sm:$0xff]  ;;  %v1033_v63 = vld [vmem:[#allocation4 + $0x10] sm:$0xf] }
 0x13a   : > { %v621_v13 = vpop.f32.mrf.mxu0  ;;  %2059 = vmatpush.bf16.msrb.mxu3 %v3484_v9 }
 0x13b   : > { %v622_v14 = vadd.f32 %v4075_v50, %v621_v13 }
 0x13c   : > { %1211 = vmatmul.bf16.gmra.mxu1 %v2990_v11  ;;  %v702_v11 = vmax.f32 %v669_v7, 0.0 }
 0x13d   : > { %v683_v17 = vmax.f32 %v622_v14, 0.0  ;;  %v3483_v14 = vld [vmem:[#allocation11 + $0x148] sm:$0xff] }
 0x13e   : > { %v734_v13 = vpack.c.bf16 %v702_v11, %v702_v11  ;;  %2060 = vmatpush.bf16.msrb.mxu3 %v3483_v14 }
 0x13f   : > { %v715_v19 = vpack.c.bf16 %v683_v17, %v683_v17  ;;  %v786_v17 = vsel %vm4044_vm2, 0, %v785_v16 }
 0x140   : > { %v2993_v32 = vld [vmem:[#allocation3 + $0x20] sm:$0xf]  ;;  %1076 = vst [vmem:[#allocation5 + $0x38] sm:$0xf] %v734_v13 }
 0x141   : > { %937 = vst [vmem:[#allocation3 + $0x28] sm:$0xf] %v715_v19  ;;  %v3481_v19 = vld [vmem:[#allocation11 + $0x138] sm:$0xff] }
 0x142   : > { %v623_v23 = vpop.f32.mrf.mxu0  ;;  %787 = vst [vmem:[#allocation4 + $0x20] sm:$0x1] %v786_v17  ;;  %1808 = vmatpush.bf16.msra.mxu2 %v3481_v19  ;;  %2061 = vmatpush.bf16.msrb.mxu3 %v3482_v21 }
 0x143   : > { %v624_v24 = vadd.f32 %v4075_v50, %v623_v23 }
 0x145   : > { %v684_v27 = vmax.f32 %v624_v24, 0.0 }
 0x147   : > { %v716_v29 = vpack.c.bf16 %v684_v27, %v684_v27 }
 0x148   : > { %v3440_v33 = vld [vmem:[#allocation3 + $0x24] sm:$0xf0] }
 0x149   : > { %938 = vst [vmem:[#allocation3 + $0x30] sm:$0xf] %v716_v29  ;;  %v2994_v35 = vor.u32 %v3440_v33, %v2993_v32  ;;  %v788_v33 = vld [vmem:[#allocation4 + $0x28] sm:$0x1] }
 0x14a   : > { %v626_v37 = vpop.f32.mrf.mxu0  ;;  %v789_v34 = vsel %vm4044_vm2, 0, %v788_v33 }
 0x14b   : > { %v627_v39 = vadd.f32 %v4075_v50, %v626_v37  ;;  %v3480_v37 = vld [vmem:[#allocation11 + $0x130] sm:$0xff]  ;;  %790 = vst [vmem:[#allocation4 + $0x28] sm:$0x1] %v789_v34 }
 0x14c   : > { %1216 = vmatmul.bf16.gmra.mxu1 %v2994_v35  ;;  %1809 = vmatpush.bf16.msra.mxu2 %v3480_v37 }
 0x14d   : > { %v685_v42 = vmax.f32 %v627_v39, 0.0 }
 0x14f   : > { %v717_v46 = vpack.c.bf16 %v685_v42, %v685_v42  ;;  %v1030_v42 = vld [vmem:[#allocation4 + $0xc] sm:$0x1] }
 0x150   : > { %v2997_v1 = vld [vmem:[#allocation3 + $0x30] sm:$0xf]  ;;  %1810 = vmatpush.bf16.msra.mxu2 %v3479_v54 }
 0x151   : > { %939 = vst [vmem:[#allocation3 + $0x38] sm:$0xf] %v717_v46 }
 0x152   : > { %v628_v53 = vpop.f32.mrf.mxu0 }
 0x153   : > { %v629_v55 = vadd.f32 %v4075_v50, %v628_v53 }
 0x155   : > { %v686_v58 = vmax.f32 %v629_v55, 0.0 }
 0x157   : > { %v718_v61 = vpack.c.bf16 %v686_v58, %v686_v58 }
 0x158   : > { %v3441_v2 = vld [vmem:[#allocation3 + $0x34] sm:$0xf0] }
 0x159   : > { %940 = vst [vmem:[#allocation3 + $0x40] sm:$0xf] %v718_v61  ;;  %v2998_v6 = vor.u32 %v3441_v2, %v2997_v1 }
 0x15a   : > { %v631_v8 = vpop.f32.mrf.mxu0 }
 0x15b   : > { %v632_v10 = vadd.f32 %v4075_v50, %v631_v8 }
 0x15c   : > { %1221 = vmatmul.bf16.gmra.mxu1 %v2998_v6 }
 0x15d   : > { %v687_v12 = vmax.f32 %v632_v10, 0.0 }
 0x15f   : > { %v719_v15 = vpack.c.bf16 %v687_v12, %v687_v12 }
 0x161   : > { %v942_v18 = vshrl.u32 %v719_v15, 16  ;;  %v945_v23 = vshll.u32 %v719_v15, 16 }
 0x162   : > { %v633_v20 = vpop.f32.mrf.mxu0 }
 0x163   : > { %v944_v22 = vrot.slane %v942_v18, 7  ;;  %v634_v24 = vadd.f32 %v4075_v50, %v633_v20 }
 0x165   : > { %v947_v27 = vor.u32 %v945_v23, %v944_v22  ;;  %v948_v28 = vrot.slane %v944_v22, 4  ;;  %v688_v29 = vmax.f32 %v634_v24, 0.0 }
 0x167   : > { %v1022_v30 = vsel %vm4084_vm5, %v947_v27, %v1021_v25  ;;  %v1025_v31 = vsel %vm4044_vm2, %v948_v28, %v1024_v26  ;;  %v720_v32 = vpack.c.bf16 %v688_v29, %v688_v29  ;;  %v3478_v25 = vld [vmem:[#allocation11 + $0x120] sm:$0xff]  ;;  %v794_v26 = vld [vmem:[#allocation4 + $0x38] sm:$0x1]  ;;  %v1042_v29 = vld [vmem:[#allocation4 + $0x1c] sm:$0x1] }
 0x168   : > { %1023 = vst [vmem:[#allocation4] sm:$0xf] %v1022_v30  ;;  %1811 = vmatpush.bf16.msra.mxu2 %v3478_v25  ;;  %v795_v34 = vsel %vm4044_vm2, 0, %v794_v26 }
 0x169   : > { %1026 = vst [vmem:[#allocation4 + $0x4] sm:$0x1] %v1025_v31  ;;  %v950_v35 = vshrl.u32 %v720_v32, 16  ;;  %v953_v39 = vshll.u32 %v720_v32, 16  ;;  %v1039_v32 = vld [vmem:[#allocation4 + $0x18] sm:$0xf] }
 0x16a   : > { %v636_v36 = vpop.f32.mrf.mxu0  ;;  %796 = vst [vmem:[#allocation4 + $0x38] sm:$0x1] %v795_v34  ;;  %v3520_v34 = vld [vmem:[#allocation11 + $0x230] sm:$0xff] }
 0x16b   : > { %v952_v38 = vrot.slane %v950_v35, 7  ;;  %v637_v40 = vadd.f32 %v4075_v50, %v636_v36  ;;  %v3501_v35 = vld [vmem:[#allocation11 + $0x1b8] sm:$0xff] }
 0x16c   : > { %2188 = vmatpush.bf16.msra.mxu1 %v3501_v35  ;;  %v1051_v35 = vld [vmem:[#allocation4 + $0x28] sm:$0xf] }
 0x16d   : > { %v955_v43 = vor.u32 %v953_v39, %v952_v38  ;;  %v956_v44 = vrot.slane %v952_v38, 4  ;;  %v689_v45 = vmax.f32 %v637_v40, 0.0 }
 0x16f   : > { %v1028_v46 = vsel %vm4084_vm5, %v955_v43, %v1027_v41  ;;  %v1031_v48 = vsel %vm4044_vm2, %v956_v44, %v1030_v42  ;;  %v721_v49 = vpack.c.bf16 %v689_v45, %v689_v45  ;;  %v1845_v51 = vld [vmem:[#allocation4] sm:$0xf] }
 0x170   : > { %1029 = vst [vmem:[#allocation4 + $0x8] sm:$0xf] %v1028_v46  ;;  %v1862_v55 = vshrl.u32 %v1845_v51, 16  ;;  %v1865_v56 = vshll.u32 %v1845_v51, 16  ;;  %v1846_v7 = vld [vmem:[#allocation4 + $0x4] sm:$0x1] }
 0x171   : > { %1032 = vst [vmem:[#allocation4 + $0xc] sm:$0x1] %v1031_v48  ;;  %v958_v52 = vshrl.u32 %v721_v49, 16  ;;  %v961_v59 = vshll.u32 %v721_v49, 16  ;;  %v3113_v12 = vld [vmem:[#allocation4] sm:$0xf] }
 0x172   : > { %v638_v53 = vpop.f32.mrf.mxu0  ;;  %v1864_v1 = vrot.slane %v1862_v55, 4  ;;  %v1867_v2 = vrot.slane %v1865_v56, 5  ;;  %v1871_v17 = vshll.u32 %v1846_v7, 16  ;;  %v3477_v49 = vld [vmem:[#allocation11 + $0x118] sm:$0xff]  ;;  %v3500_v56 = vld [vmem:[#allocation11 + $0x1b0] sm:$0xff] }
 0x173   : > { %v960_v58 = vrot.slane %v958_v52, 7  ;;  %v639_v61 = vadd.f32 %v4075_v50, %v638_v53  ;;  %1812 = vmatpush.bf16.msra.mxu2 %v3477_v49  ;;  %2189 = vmatpush.bf16.msra.mxu1 %v3500_v56  ;;  %v3474_v56 = vld [vmem:[#allocation11 + $0x100] sm:$0xff] }
 0x174   : > { %v1868_v8 = vor.u32 %v1867_v2, %v1864_v1  ;;  %v1873_v33 = vrot.slane %v1871_v17, 5  ;;  %v1048_v1 = vld [vmem:[#allocation4 + $0x24] sm:$0x1]  ;;  %v3521_v17 = vld [vmem:[#allocation11 + $0x238] sm:$0xff] }
 0x175   : > { %v963_v3 = vor.u32 %v961_v59, %v960_v58  ;;  %v964_v4 = vrot.slane %v960_v58, 4  ;;  %v690_v6 = vmax.f32 %v639_v61, 0.0  ;;  %v4215_v59 = vld [vmem:[%s4375_s2] ss:$0 sm:$0xff]  ;;  %2568 = vmatpush.bf16.msra.mxu3 %v3521_v17 }
 0x176   : > { %v1869_v22 = vrot.slane %v1868_v8, 4 }
 0x177   : > { %v1034_v9 = vsel %vm4084_vm5, %v963_v3, %v1033_v63  ;;  %v1037_v10 = vsel %vm4044_vm2, %v964_v4, %v1036_v60  ;;  %v722_v11 = vpack.c.bf16 %v690_v6, %v690_v6  ;;  %v3458_v13 = vld [vmem:[#allocation4 + $0x4] sm:$0xf0]  ;;  %v1045_v63 = vld [vmem:[#allocation4 + $0x20] sm:$0xf]  ;;  %v3499_v4 = vld [vmem:[#allocation11 + $0x1a8] sm:$0xff]  ;;  %1813 = vmatpush.bf16.msra.mxu2 %v3476_v62 }
 0x178   : > { %v1847_v14 = vld [vmem:[#allocation4 + $0x8] sm:$0xf]  ;;  %1035 = vst [vmem:[#allocation4 + $0x10] sm:$0xf] %v1034_v9  ;;  %v3114_v15 = vor.u32 %v3458_v13, %v3113_v12  ;;  %v1848_v16 = vld [vmem:[#allocation4 + $0xc] sm:$0x1]  ;;  %v1874_v40 = vsel %vm4102_vm8, %v1869_v22, %v1873_v33  ;;  %2190 = vmatpush.bf16.msra.mxu1 %v3499_v4 }
 0x179   : > { %v1876_v18 = vshrl.u32 %v1847_v14, 16  ;;  %1038 = vst [vmem:[#allocation4 + $0x14] sm:$0x1] %v1037_v10  ;;  %v966_v19 = vshrl.u32 %v722_v11, 16  ;;  %v1879_v20 = vshll.u32 %v1847_v14, 16  ;;  %v1885_v24 = vshll.u32 %v1848_v16, 16  ;;  %2569 = vmatpush.bf16.msra.mxu3 %v3520_v34 }
 0x17a   : > { %v641_v21 = vpop.f32.mrf.mxu0  ;;  %1682 = vmatmul.bf16.vlgmr.msrb.gmra.mxu1 %v3114_v15  ;;  %v969_v28 = vshll.u32 %v722_v11, 16  ;;  %v1990_v53 = vunpack.c.l.b16 %v1874_v40  ;;  %v3494_v34 = vld [vmem:[#allocation11 + $0x180] sm:$0xff] }
 0x17b   : > { %v1878_v23 = vrot.slane %v1876_v18, 4  ;;  %v968_v27 = vrot.slane %v966_v19, 7  ;;  %v642_v30 = vadd.f32 %v4075_v50, %v641_v21  ;;  %v1881_v31 = vrot.slane %v1879_v20, 5 }
 0x17c   : > { %v1887_v41 = vrot.slane %v1885_v24, 5 }
 0x17d   : > { %v971_v36 = vor.u32 %v969_v28, %v968_v27  ;;  %v972_v37 = vrot.slane %v968_v27, 4  ;;  %v691_v38 = vmax.f32 %v642_v30, 0.0  ;;  %v1882_v39 = vor.u32 %v1881_v31, %v1878_v23  ;;  %v3475_v28 = vld [vmem:[#allocation11 + $0x108] sm:$0xff] }
 0x17e   : > { %1814 = vmatpush.bf16.msra.mxu2 %v3475_v28  ;;  %v3513_v28 = vld [vmem:[#allocation11 + $0x1f8] sm:$0xff] }
 0x17f   : > { %v1040_v50 = vsel %vm4084_vm5, %v971_v36, %v1039_v32  ;;  %v1043_v42 = vsel %vm4044_vm2, %v972_v37, %v1042_v29  ;;  %v723_v43 = vpack.c.bf16 %v691_v38, %v691_v38  ;;  %v1883_v44 = vrot.slane %v1882_v39, 4  ;;  %v1849_v45 = vld [vmem:[#allocation4 + $0x10] sm:$0xf]  ;;  %v1054_v36 = vld [vmem:[#allocation4 + $0x2c] sm:$0x1] }
 0x180   : > { %1041 = vst [vmem:[#allocation4 + $0x18] sm:$0xf] %v1040_v50  ;;  %v1890_v51 = vshrl.u32 %v1849_v45, 16  ;;  %v1893_v55 = vshll.u32 %v1849_v45, 16  ;;  %v1850_v9 = vld [vmem:[#allocation4 + $0x14] sm:$0x1] }
 0x181   : > { %1044 = vst [vmem:[#allocation4 + $0x1c] sm:$0x1] %v1043_v42  ;;  %v974_v46 = vshrl.u32 %v723_v43, 16  ;;  %v1888_v48 = vsel %vm4102_vm8, %v1883_v44, %v1887_v41  ;;  %v977_v58 = vshll.u32 %v723_v43, 16  ;;  %v3117_v10 = vld [vmem:[#allocation4 + $0x10] sm:$0xf] }
 0x182   : > { %v643_v52 = vpop.f32.mrf.mxu0  ;;  %v1991_v54 = vunpack.c.l.b16 %v1888_v48  ;;  %v1892_v61 = vrot.slane %v1890_v51, 4  ;;  %v1895_v3 = vrot.slane %v1893_v55, 5  ;;  %v1899_v20 = vshll.u32 %v1850_v9, 16  ;;  %v3498_v29 = vld [vmem:[#allocation11 + $0x1a0] sm:$0xff]  ;;  %v3497_v38 = vld [vmem:[#allocation11 + $0x198] sm:$0xff]  ;;  %v3519_v51 = vld [vmem:[#allocation11 + $0x228] sm:$0xff]  ;;  %1815 = vmatpush.bf16.msra.mxu2 %v3474_v56 }
 0x183   : > { %v976_v57 = vrot.slane %v974_v46, 7  ;;  %v644_v60 = vadd.f32 %v4215_v59, %v643_v52  ;;  %2191 = vmatpush.bf16.msra.mxu1 %v3498_v29  ;;  %2570 = vmatpush.bf16.msra.mxu3 %v3519_v51 }
 0x184   : > { %v1998_v2 = vpack.c.b16 %v1991_v54, %v1990_v53  ;;  %v1896_v11 = vor.u32 %v1895_v3, %v1892_v61  ;;  %v1901_v37 = vrot.slane %v1899_v20, 5  ;;  %v1060_v3 = vld [vmem:[#allocation4 + $0x34] sm:$0x1] }
 0x185   : > { %v979_v6 = vor.u32 %v977_v58, %v976_v57  ;;  %v980_v7 = vrot.slane %v976_v57, 4  ;;  %v692_v8 = vmax.f32 %v644_v60, 0.0 }
 0x186   : > { %2062 = vmatmul.bf16.vlgmr.msrb.gmra.mxu3 %v1998_v2  ;;  %v1897_v25 = vrot.slane %v1896_v11, 4  ;;  %2322 = vmatpush.bf16.msrb.mxu2 %v3513_v28 }
 0x187   : > { %v1046_v12 = vsel %vm4084_vm5, %v979_v6, %v1045_v63  ;;  %v1049_v13 = vsel %vm4044_vm2, %v980_v7, %v1048_v1  ;;  %v724_v14 = vpack.c.bf16 %v692_v8, %v692_v8  ;;  %v3459_v15 = vld [vmem:[#allocation4 + $0x14] sm:$0xf0]  ;;  %2192 = vmatpush.bf16.msra.mxu1 %v3497_v38  ;;  %v3496_v63 = vld [vmem:[#allocation11 + $0x190] sm:$0xff]  ;;  %v3518_v6 = vld [vmem:[#allocation11 + $0x220] sm:$0xff] }
 0x188   : > { %v1851_v16 = vld [vmem:[#allocation4 + $0x18] sm:$0xf]  ;;  %1047 = vst [vmem:[#allocation4 + $0x20] sm:$0xf] %v1046_v12  ;;  %v3118_v18 = vor.u32 %v3459_v15, %v3117_v10  ;;  %v1852_v19 = vld [vmem:[#allocation4 + $0x1c] sm:$0x1]  ;;  %v1902_v42 = vsel %vm4102_vm8, %v1897_v25, %v1901_v37  ;;  %2571 = vmatpush.bf16.msra.mxu3 %v3518_v6 }
 0x189   : > { %v1904_v21 = vshrl.u32 %v1851_v16, 16  ;;  %1050 = vst [vmem:[#allocation4 + $0x24] sm:$0x1] %v1049_v13  ;;  %v982_v22 = vshrl.u32 %v724_v14, 16  ;;  %v1907_v23 = vshll.u32 %v1851_v16, 16  ;;  %v1913_v27 = vshll.u32 %v1852_v19, 16 }
 0x18a   : > { %v646_v24 = vpop.f32.mrf.mxu0  ;;  %1687 = vmatmul.bf16.gmra.mxu1 %v3118_v18  ;;  %v985_v31 = vshll.u32 %v724_v14, 16  ;;  %v1992_v58 = vunpack.c.l.b16 %v1902_v42  ;;  %v1057_v7 = vld [vmem:[#allocation4 + $0x30] sm:$0xf]  ;;  %v3495_v10 = vld [vmem:[#allocation11 + $0x188] sm:$0xff] }
 0x18b   : > { %v1906_v26 = vrot.slane %v1904_v21, 4  ;;  %v984_v30 = vrot.slane %v982_v22, 7  ;;  %v647_v32 = vadd.f32 %v4215_v59, %v646_v24  ;;  %v1909_v33 = vrot.slane %v1907_v23, 5  ;;  %2193 = vmatpush.bf16.msra.mxu1 %v3496_v63  ;;  %v3517_v22 = vld [vmem:[#allocation11 + $0x218] sm:$0xff]  ;;  %v3511_v6 = vld [vmem:[#allocation11 + $0x1e8] sm:$0xff] }
 0x18c   : > { %v1915_v43 = vrot.slane %v1913_v27, 5  ;;  %2572 = vmatpush.bf16.msra.mxu3 %v3517_v22 }
 0x18d   : > { %v987_v39 = vor.u32 %v985_v31, %v984_v30  ;;  %v988_v40 = vrot.slane %v984_v30, 4  ;;  %v693_v41 = vmax.f32 %v647_v32, 0.0  ;;  %v1910_v50 = vor.u32 %v1909_v33, %v1906_v26 }
 0x18f   : > { %v1052_v44 = vsel %vm4084_vm5, %v987_v39, %v1051_v35  ;;  %v1055_v45 = vsel %vm4044_vm2, %v988_v40, %v1054_v36  ;;  %v725_v46 = vpack.c.bf16 %v693_v41, %v693_v41  ;;  %v1911_v48 = vrot.slane %v1910_v50, 4  ;;  %v1853_v49 = vld [vmem:[#allocation4 + $0x20] sm:$0xf]  ;;  %2194 = vmatpush.bf16.msra.mxu1 %v3495_v10  ;;  %v1308_v36 = vpop.f32.mrf.mxu2  ;;  %v1063_v41 = vld [vmem:[#allocation4 + $0x38] sm:$0xf] }
 0x190   : > { %1053 = vst [vmem:[#allocation4 + $0x28] sm:$0xf] %v1052_v44  ;;  %v1918_v52 = vshrl.u32 %v1853_v49, 16  ;;  %v1921_v53 = vshll.u32 %v1853_v49, 16  ;;  %v1854_v9 = vld [vmem:[#allocation4 + $0x24] sm:$0x1]  ;;  %v4237_v44 = vpop.f32.mrf.mxu3 }
 0x191   : > { %1056 = vst [vmem:[#allocation4 + $0x2c] sm:$0x1] %v1055_v45  ;;  %v990_v54 = vshrl.u32 %v725_v46, 16  ;;  %v1916_v55 = vsel %vm4102_vm8, %v1911_v48, %v1915_v43  ;;  %v993_v2 = vshll.u32 %v725_v46, 16  ;;  %v3121_v14 = vld [vmem:[#allocation4 + $0x20] sm:$0xf] }
 0x192   : > { %v648_v57 = vpop.f32.mrf.mxu0  ;;  %v1993_v60 = vunpack.c.l.b16 %v1916_v55  ;;  %v1920_v61 = vrot.slane %v1918_v52, 4  ;;  %v1923_v62 = vrot.slane %v1921_v53, 5  ;;  %v1927_v21 = vshll.u32 %v1854_v9, 16  ;;  %v3516_v35 = vld [vmem:[#allocation11 + $0x210] sm:$0xff]  ;;  %v1066_v50 = vld [vmem:[#allocation4 + $0x3c] sm:$0x1] }
 0x193   : > { %v992_v1 = vrot.slane %v990_v54, 7  ;;  %v649_v4 = vadd.f32 %v4215_v59, %v648_v57  ;;  %v3512_v40 = vld [vmem:[#allocation11 + $0x1f0] sm:$0xff]  ;;  %2195 = vmatpush.bf16.msra.mxu1 %v3494_v34  ;;  %2573 = vmatpush.bf16.msra.mxu3 %v3516_v35  ;;  %v3515_v49 = vld [vmem:[#allocation11 + $0x208] sm:$0xff] }
 0x194   : > { %v1999_v8 = vpack.c.b16 %v1993_v60, %v1992_v58  ;;  %v1924_v15 = vor.u32 %v1923_v62, %v1920_v61  ;;  %v1929_v42 = vrot.slane %v1927_v21, 5  ;;  %2323 = vmatpush.bf16.msrb.mxu2 %v3512_v40 }
 0x195   : > { %v995_v11 = vor.u32 %v993_v2, %v992_v1  ;;  %v996_v12 = vrot.slane %v992_v1, 4  ;;  %v694_v13 = vmax.f32 %v649_v4, 0.0 }
 0x196   : > { %2067 = vmatmul.bf16.gmra.mxu3 %v1999_v8  ;;  %v1925_v30 = vrot.slane %v1924_v15, 4 }
 0x197   : > { %v1058_v16 = vsel %vm4084_vm5, %v995_v11, %v1057_v7  ;;  %v1061_v17 = vsel %vm4044_vm2, %v996_v12, %v1060_v3  ;;  %v726_v18 = vpack.c.bf16 %v694_v13, %v694_v13  ;;  %v3460_v19 = vld [vmem:[#allocation4 + $0x24] sm:$0xf0]  ;;  %2574 = vmatpush.bf16.msra.mxu3 %v3515_v49  ;;  %v3514_v3 = vld [vmem:[#allocation11 + $0x200] sm:$0xff]  ;;  %v1310_v7 = vpop.f32.mrf.mxu2 }
 0x198   : > { %v1855_v20 = vld [vmem:[#allocation4 + $0x28] sm:$0xf]  ;;  %1059 = vst [vmem:[#allocation4 + $0x30] sm:$0xf] %v1058_v16  ;;  %v3122_v23 = vor.u32 %v3460_v19, %v3121_v14  ;;  %v1856_v24 = vld [vmem:[#allocation4 + $0x2c] sm:$0x1]  ;;  %v1930_v51 = vsel %vm4102_vm8, %v1925_v30, %v1929_v42  ;;  %2324 = vmatpush.bf16.msrb.mxu2 %v3511_v6  ;;  %v1551_v11 = vpop.f32.mrf.mxu3 }
 0x199   : > { %v1932_v25 = vshrl.u32 %v1855_v20, 16  ;;  %v1935_v26 = vshll.u32 %v1855_v20, 16  ;;  %1062 = vst [vmem:[#allocation4 + $0x34] sm:$0x1] %v1061_v17  ;;  %v998_v27 = vshrl.u32 %v726_v18, 16  ;;  %v1941_v33 = vshll.u32 %v1856_v24, 16 }
 0x19a   : > { %v651_v29 = vpop.f32.mrf.mxu0  ;;  %1692 = vmatmul.bf16.gmra.mxu1 %v3122_v23  ;;  %v1001_v38 = vshll.u32 %v726_v18, 16  ;;  %v1994_v62 = vunpack.c.l.b16 %v1930_v51  ;;  %v2361_v23 = vld [vmem:[#allocation2 + $0x10] sm:$0xf] }
 0x19b   : > { %v1934_v31 = vrot.slane %v1932_v25, 4  ;;  %v1937_v32 = vrot.slane %v1935_v26, 5  ;;  %v1000_v37 = vrot.slane %v998_v27, 7  ;;  %v652_v39 = vadd.f32 %v4215_v59, %v651_v29  ;;  %2575 = vmatpush.bf16.msra.mxu3 %v3514_v3  ;;  %v3510_v29 = vld [vmem:[#allocation11 + $0x1e0] sm:$0xff]  ;;  %v3490_v3 = vld [vmem:[#allocation2 + $0xc] sm:$0xf0] }
 0x19c   : > { %v1943_v53 = vrot.slane %v1941_v33, 5  ;;  %v2359_v33 = vld [vmem:[#allocation2 + $0x8] sm:$0xf]  ;;  %v2390_v34 = vshrl.u32 %v2361_v23, 16  ;;  %2325 = vmatpush.bf16.msrb.mxu2 %v3510_v29 }
 0x19d   : > { %v1938_v43 = vor.u32 %v1937_v32, %v1934_v31  ;;  %v1003_v45 = vor.u32 %v1001_v38, %v1000_v37  ;;  %v1004_v46 = vrot.slane %v1000_v37, 4  ;;  %v695_v48 = vmax.f32 %v652_v39, 0.0 }
 0x19e   : > { %v2393_v38 = vshll.u32 %v2361_v23, 16  ;;  %v2376_v42 = vshrl.u32 %v2359_v33, 16  ;;  %v2392_v49 = vrot.slane %v2390_v34, 4 }
 0x19f   : > { %v1939_v52 = vrot.slane %v1938_v43, 4  ;;  %v1064_v54 = vsel %vm4084_vm5, %v1003_v45, %v1063_v41  ;;  %v1067_v55 = vsel %vm4044_vm2, %v1004_v46, %v1066_v50  ;;  %v727_v56 = vpack.c.bf16 %v695_v48, %v695_v48  ;;  %v1857_v57 = vld [vmem:[#allocation4 + $0x30] sm:$0xf]  ;;  %v1313_v41 = vpop.f32.mrf.mxu2 }
 0x1a0   : > { %1065 = vst [vmem:[#allocation4 + $0x38] sm:$0xf] %v1064_v54  ;;  %v1946_v60 = vshrl.u32 %v1857_v57, 16  ;;  %v1949_v61 = vshll.u32 %v1857_v57, 16  ;;  %v1858_v9 = vld [vmem:[#allocation4 + $0x34] sm:$0x1]  ;;  %v1554_v51 = vpop.f32.mrf.mxu3 }
 0x1a1   : > { %v1944_v58 = vsel %vm4102_vm8, %v1939_v52, %v1943_v53  ;;  %1068 = vst [vmem:[#allocation4 + $0x3c] sm:$0x1] %v1067_v55  ;;  %v3125_v13 = vld [vmem:[#allocation4 + $0x30] sm:$0xf]  ;;  %v1955_v18 = vshll.u32 %v1858_v9, 16  ;;  %v2379_v43 = vshll.u32 %v2359_v33, 16 }
 0x1a2   : > { %v1995_v63 = vunpack.c.l.b16 %v1944_v58  ;;  %1069 = vst [vmem:[#allocation5] sm:$0xf] %v727_v56  ;;  %v653_v1 = vpop.f32.mrf.mxu0  ;;  %v1948_v5 = vrot.slane %v1946_v60, 4  ;;  %v1951_v2 = vrot.slane %v1949_v61, 5  ;;  %v2395_v55 = vrot.slane %v2393_v38, 5 }
 0x1a3   : > { %v654_v0 = vadd.f32 %v4215_v59, %v653_v1  ;;  %v1957_v31 = vrot.slane %v1955_v18, 5  ;;  %v2378_v61 = vrot.slane %v2376_v42, 4  ;;  %v2362_v1 = vld [vmem:[#allocation2 + $0x14] sm:$0x1] }
 0x1a4   : > { %v2000_v4 = vpack.c.b16 %v1995_v63, %v1994_v62  ;;  %v1952_v10 = vor.u32 %v1951_v2, %v1948_v5  ;;  %v2381_v62 = vrot.slane %v2379_v43, 5  ;;  %v3509_v63 = vld [vmem:[#allocation11 + $0x1d8] sm:$0xff]  ;;  %v2399_v9 = vshll.u32 %v2362_v1, 16  ;;  %v2366_v43 = vld [vmem:[#allocation2 + $0x24] sm:$0x1] }
 0x1a5   : > { %v696_v8 = vmax.f32 %v654_v0, 0.0  ;;  %v2396_v0 = vor.u32 %v2395_v55, %v2392_v49  ;;  %2326 = vmatpush.bf16.msrb.mxu2 %v3509_v63  ;;  %v2367_v1 = vld [vmem:[#allocation2 + $0x28] sm:$0xf] }
 0x1a6   : > { %2072 = vmatmul.bf16.gmra.mxu3 %v2000_v4  ;;  %v1953_v22 = vrot.slane %v1952_v10, 4  ;;  %v2360_v4 = vld [vmem:[#allocation2 + $0xc] sm:$0x1] }
 0x1a7   : > { %v728_v12 = vpack.c.bf16 %v696_v8, %v696_v8  ;;  %v3461_v14 = vld [vmem:[#allocation4 + $0x34] sm:$0xf0] }
 0x1a8   : > { %v1859_v15 = vld [vmem:[#allocation4 + $0x38] sm:$0xf]  ;;  %v3126_v16 = vor.u32 %v3461_v14, %v3125_v13  ;;  %v1860_v17 = vld [vmem:[#allocation4 + $0x3c] sm:$0x1]  ;;  %v2385_v13 = vshll.u32 %v2360_v4, 16  ;;  %v2397_v14 = vrot.slane %v2396_v0, 4 }
 0x1a9   : > { %v1960_v19 = vshrl.u32 %v1859_v15, 16  ;;  %v1963_v20 = vshll.u32 %v1859_v15, 16  ;;  %1070 = vst [vmem:[#allocation5 + $0x8] sm:$0xf] %v728_v12  ;;  %v1207_v21 = vpop.f32.mrf.mxu1  ;;  %v1969_v28 = vshll.u32 %v1860_v17, 16  ;;  %v1556_v17 = vpop.f32.mrf.mxu3 }
 0x1aa   : > { %v1309_v24 = vadd.f32 %v1308_v36, %v1207_v21  ;;  %v656_v25 = vpop.f32.mrf.mxu0  ;;  %1697 = vmatmul.bf16.gmra.mxu1 %v3126_v16  ;;  %v1958_v36 = vsel %vm4102_vm8, %v1953_v22, %v1957_v31  ;;  %v3161_v45 = vld [vmem:[#allocation5] sm:$0xf]  ;;  %v3241_v8 = vld [vmem:[#allocation2 + $0x8] sm:$0xf]  ;;  %v3508_v16 = vld [vmem:[#allocation11 + $0x1d0] sm:$0xff]  ;;  %v2387_v22 = vrot.slane %v2385_v13, 5 }
 0x1ab   : > { %v1962_v26 = vrot.slane %v1960_v19, 4  ;;  %v1965_v27 = vrot.slane %v1963_v20, 5  ;;  %v657_v30 = vadd.f32 %v4215_v59, %v656_v25  ;;  %v1971_v40 = vrot.slane %v1969_v28, 5  ;;  %v2363_v20 = vld [vmem:[#allocation2 + $0x18] sm:$0xf]  ;;  %2327 = vmatpush.bf16.msrb.mxu2 %v3508_v16 }
 0x1ac   : > { %v4250_v35 = vadd.f32 %v4237_v44, %v1309_v24  ;;  %v1996_v53 = vunpack.c.l.b16 %v1958_v36  ;;  %v3242_v10 = vor.u32 %v3490_v3, %v3241_v8  ;;  %v2401_v19 = vrot.slane %v2399_v9, 5  ;;  %v3472_v9 = vld [vmem:[#allocation5 + $0x24] sm:$0xf0] }
 0x1ad   : > { %v1966_v32 = vor.u32 %v1965_v27, %v1962_v26  ;;  %v697_v37 = vmax.f32 %v657_v30, 0.0  ;;  %v2404_v27 = vshrl.u32 %v2363_v20, 16  ;;  %v2407_v28 = vshll.u32 %v2363_v20, 16 }
 0x1ae   : > { %v2402_v23 = vsel %vm4102_vm8, %v2397_v14, %v2401_v19  ;;  %v2435_v13 = vshll.u32 %v2367_v1, 16 }
 0x1af   : > { %v1967_v39 = vrot.slane %v1966_v32, 4  ;;  %v729_v50 = vpack.c.bf16 %v697_v37, %v697_v37  ;;  %v2505_v31 = vunpack.c.l.b16 %v2402_v23 }
 0x1b0   : > { %v3470_v46 = vld [vmem:[#allocation5 + $0x4] sm:$0xf0] }
 0x1b1   : > { %v1972_v48 = vsel %vm4102_vm8, %v1967_v39, %v1971_v40  ;;  %1071 = vst [vmem:[#allocation5 + $0x10] sm:$0xf] %v729_v50  ;;  %v1209_v44 = vpop.f32.mrf.mxu1  ;;  %v3162_v52 = vor.u32 %v3470_v46, %v3161_v45  ;;  %v2406_v40 = vrot.slane %v2404_v27, 4  ;;  %v3507_v50 = vld [vmem:[#allocation11 + $0x1c8] sm:$0xff]  ;;  %v1559_v46 = vpop.f32.mrf.mxu3 }
 0x1b2   : > { %v1997_v54 = vunpack.c.l.b16 %v1972_v48  ;;  %v1311_v56 = vadd.f32 %v1310_v7, %v1209_v44  ;;  %v658_v57 = vpop.f32.mrf.mxu0  ;;  %v2382_v7 = vor.u32 %v2381_v62, %v2378_v61  ;;  %v3491_v48 = vld [vmem:[#allocation2 + $0x1c] sm:$0xf0]  ;;  %2328 = vmatpush.bf16.msrb.mxu2 %v3507_v50  ;;  %v3245_v44 = vld [vmem:[#allocation2 + $0x18] sm:$0xf] }
 0x1b3   : > { %v659_v58 = vadd.f32 %v4215_v59, %v658_v57  ;;  %1816 = vmatmul.bf16.vlgmr.msra.gmra.mxu2 %v3162_v52  ;;  %v1315_v59 = vpop.f32.mrf.mxu2  ;;  %v3506_v61 = vld [vmem:[#allocation11 + $0x1c0] sm:$0xff] }
 0x1b4   : > { %v2001_v60 = vpack.c.b16 %v1997_v54, %v1996_v53  ;;  %v4257_v5 = vadd.f32 %v1551_v11, %v1311_v56  ;;  %v2365_v11 = vld [vmem:[#allocation2 + $0x20] sm:$0xf]  ;;  %v2383_v18 = vrot.slane %v2382_v7, 4  ;;  %v2427_v53 = vshll.u32 %v2366_v43, 16  ;;  %v3169_v7 = vld [vmem:[#allocation5 + $0x20] sm:$0xf] }
 0x1b5   : > { %v698_v2 = vmax.f32 %v659_v58, 0.0  ;;  %v2418_v24 = vshrl.u32 %v2365_v11, 16  ;;  %v2421_v25 = vshll.u32 %v2365_v11, 16  ;;  %v3246_v54 = vor.u32 %v3491_v48, %v3245_v44  ;;  %v3173_v44 = vld [vmem:[#allocation5 + $0x30] sm:$0xf] }
 0x1b6   : > { %2077 = vmatmul.bf16.gmra.mxu3 %v2001_v60  ;;  %v2388_v26 = vsel %vm4102_vm8, %v2383_v18, %v2387_v22  ;;  %v2369_v60 = vld [vmem:[#allocation2 + $0x30] sm:$0xf]  ;;  %v2429_v63 = vrot.slane %v2427_v53, 5  ;;  %2329 = vmatpush.bf16.msrb.mxu2 %v3506_v61  ;;  %v3170_v11 = vor.u32 %v3472_v9, %v3169_v7  ;;  %v2437_v22 = vrot.slane %v2435_v13, 5  ;;  %v3493_v9 = vld [vmem:[#allocation2 + $0x3c] sm:$0xf0] }
 0x1b7   : > { %v730_v6 = vpack.c.bf16 %v698_v2, %v698_v2  ;;  %v2420_v34 = vrot.slane %v2418_v24, 4  ;;  %v2423_v37 = vrot.slane %v2421_v25, 5  ;;  %v2504_v36 = vunpack.c.l.b16 %v2388_v26  ;;  %v2370_v24 = vld [vmem:[#allocation2 + $0x34] sm:$0x1]  ;;  %v3492_v26 = vld [vmem:[#allocation2 + $0x2c] sm:$0xf0] }
 0x1b8   : > { %v3165_v29 = vld [vmem:[#allocation5 + $0x10] sm:$0xf]  ;;  %v2449_v8 = vshll.u32 %v2369_v60, 16 }
 0x1b9   : > { %1072 = vst [vmem:[#allocation5 + $0x18] sm:$0xf] %v730_v6  ;;  %v1212_v12 = vpop.f32.mrf.mxu1  ;;  %v2512_v42 = vpack.c.b16 %v2505_v31, %v2504_v36  ;;  %v2424_v49 = vor.u32 %v2423_v37, %v2420_v34  ;;  %v2446_v6 = vshrl.u32 %v2369_v60, 16 }
 0x1ba   : > { %v1314_v15 = vadd.f32 %v1313_v41, %v1212_v12  ;;  %2196 = vmatmul.bf16.vlgmr.msra.gmra.mxu1 %v3242_v10  ;;  %v2409_v41 = vrot.slane %v2407_v28, 5  ;;  %v1561_v10 = vpop.f32.mrf.mxu3  ;;  %v2432_v12 = vshrl.u32 %v2367_v1, 16  ;;  %v2368_v28 = vld [vmem:[#allocation2 + $0x2c] sm:$0x1] }
 0x1bb   : > { %v1318_v39 = vpop.f32.mrf.mxu2  ;;  %v2425_v57 = vrot.slane %v2424_v49, 4  ;;  %v2448_v16 = vrot.slane %v2446_v6, 4 }
 0x1bc   : > { %v4259_v21 = vadd.f32 %v1554_v51, %v1314_v15  ;;  %v2364_v51 = vld [vmem:[#allocation2 + $0x1c] sm:$0x1]  ;;  %v2410_v52 = vor.u32 %v2409_v41, %v2406_v40  ;;  %v2434_v20 = vrot.slane %v2432_v12, 4  ;;  %v2373_v40 = vld [vmem:[#allocation2 + $0x40] sm:$0xf] }
 0x1bd   : > { %v2413_v56 = vshll.u32 %v2364_v51, 16  ;;  %v2430_v4 = vsel %vm4102_vm8, %v2425_v57, %v2429_v63  ;;  %v2474_v49 = vshrl.u32 %v2373_v40, 16  ;;  %v2477_v51 = vshll.u32 %v2373_v40, 16  ;;  %v3253_v12 = vld [vmem:[#allocation2 + $0x38] sm:$0xf] }
 0x1be   : > { %v2411_v62 = vrot.slane %v2410_v52, 4  ;;  %v2507_v14 = vunpack.c.l.b16 %v2430_v4  ;;  %v2438_v31 = vor.u32 %v2437_v22, %v2434_v20  ;;  %v3473_v52 = vld [vmem:[#allocation5 + $0x34] sm:$0xf0]  ;;  %v3502_v22 = vld [vmem:[#allocation3 + $0xc] sm:$0xf0] }
 0x1bf   : > { %v2415_v0 = vrot.slane %v2413_v56, 5  ;;  %v3174_v60 = vor.u32 %v3473_v52, %v3173_v44  ;;  %v2476_v61 = vrot.slane %v2474_v49, 4  ;;  %v3505_v49 = vld [vmem:[#allocation3 + $0x3c] sm:$0xf0]  ;;  %v3301_v44 = vld [vmem:[#allocation3 + $0x38] sm:$0xf] }
 0x1c0   : > { %v3471_v30 = vld [vmem:[#allocation5 + $0x14] sm:$0xf0]  ;;  %v2439_v41 = vrot.slane %v2438_v31, 4  ;;  %v3302_v52 = vor.u32 %v3505_v49, %v3301_v44 }
 0x1c1   : > { %v1214_v32 = vpop.f32.mrf.mxu1  ;;  %v3166_v33 = vor.u32 %v3471_v30, %v3165_v29  ;;  %v3249_v30 = vld [vmem:[#allocation2 + $0x28] sm:$0xf] }
 0x1c2   : > { %v1316_v38 = vadd.f32 %v1315_v59, %v1214_v32  ;;  %v2416_v59 = vsel %vm4102_vm8, %v2411_v62, %v2415_v0  ;;  %v2455_v32 = vshll.u32 %v2370_v24, 16  ;;  %v1564_v34 = vpop.f32.mrf.mxu3  ;;  %v2479_v62 = vrot.slane %v2477_v51, 5  ;;  %v3289_v24 = vld [vmem:[#allocation3 + $0x8] sm:$0xf] }
 0x1c3   : > { %1821 = vmatmul.bf16.gmra.mxu2 %v3166_v33  ;;  %v1320_v3 = vpop.f32.mrf.mxu2  ;;  %v2506_v19 = vunpack.c.l.b16 %v2416_v59  ;;  %v3250_v33 = vor.u32 %v3492_v26, %v3249_v30  ;;  %v2372_v59 = vld [vmem:[#allocation2 + $0x3c] sm:$0x1] }
 0x1c4   : > { %v4265_v45 = vadd.f32 %v1556_v17, %v1316_v38  ;;  %v2451_v17 = vrot.slane %v2449_v8, 5  ;;  %v2441_v38 = vshll.u32 %v2368_v28, 16  ;;  %v2457_v50 = vrot.slane %v2455_v32, 5  ;;  %v2374_v8 = vld [vmem:[#allocation2 + $0x44] sm:$0x1] }
 0x1c5   : > { %v2513_v23 = vpack.c.b16 %v2507_v14, %v2506_v19  ;;  %v2483_v14 = vshll.u32 %v2374_v8, 16  ;;  %v3503_v32 = vld [vmem:[#allocation3 + $0x1c] sm:$0xf0] }
 0x1c6   : > { %2576 = vmatmul.bf16.vlgmr.msra.gmra.mxu3 %v2512_v42  ;;  %v2452_v27 = vor.u32 %v2451_v17, %v2448_v16  ;;  %v2371_v42 = vld [vmem:[#allocation2 + $0x38] sm:$0xf] }
 0x1c8   : > { %v2453_v36 = vrot.slane %v2452_v27, 4  ;;  %v3290_v27 = vor.u32 %v3502_v22, %v3289_v24  ;;  %v3529_v22 = vld [vmem:[#allocation12 + $0x38] sm:$0xff] }
 0x1c9   : > { %v1217_v55 = vpop.f32.mrf.mxu1  ;;  %2705 = vmatpush.bf16.msrb.mxu1 %v3529_v22 }
 0x1ca   : > { %v1319_v58 = vadd.f32 %v1318_v39, %v1217_v55  ;;  %2201 = vmatmul.bf16.gmra.mxu1 %v3246_v54  ;;  %v2458_v48 = vsel %vm4102_vm8, %v2453_v36, %v2457_v50  ;;  %v2460_v54 = vshrl.u32 %v2371_v42, 16  ;;  %v2463_v55 = vshll.u32 %v2371_v42, 16  ;;  %v3297_v50 = vld [vmem:[#allocation3 + $0x28] sm:$0xf] }
 0x1cb   : > { %v1323_v29 = vpop.f32.mrf.mxu2  ;;  %v2509_v56 = vunpack.c.l.b16 %v2458_v48 }
 0x1cc   : > { %v4267_v2 = vadd.f32 %v1559_v46, %v1319_v58  ;;  %v2443_v46 = vrot.slane %v2441_v38, 5  ;;  %v2462_v0 = vrot.slane %v2460_v54, 4  ;;  %v2465_v4 = vrot.slane %v2463_v55, 5 }
 0x1ce   : > { %v2444_v53 = vsel %vm4102_vm8, %v2439_v41, %v2443_v46  ;;  %v2466_v13 = vor.u32 %v2465_v4, %v2462_v0 }
 0x1cf   : > { %v2508_v1 = vunpack.c.l.b16 %v2444_v53 }
 0x1d0   : > { %v2467_v17 = vrot.slane %v2466_v13, 4 }
 0x1d1   : > { %v1219_v15 = vpop.f32.mrf.mxu1  ;;  %v2514_v6 = vpack.c.b16 %v2509_v56, %v2508_v1 }
 0x1d2   : > { %v1321_v18 = vadd.f32 %v1320_v3, %v1219_v15  ;;  %v1566_v3 = vpop.f32.mrf.mxu3  ;;  %v3254_v15 = vor.u32 %v3493_v9, %v3253_v12 }
 0x1d3   : > { %1826 = vmatmul.bf16.gmra.mxu2 %v3170_v11  ;;  %v1325_v57 = vpop.f32.mrf.mxu2  ;;  %v2469_v11 = vshll.u32 %v2372_v59, 16 }
 0x1d4   : > { %v4273_v25 = vadd.f32 %v1561_v10, %v1321_v18  ;;  %v2480_v10 = vor.u32 %v2479_v62, %v2476_v61  ;;  %v2485_v18 = vrot.slane %v2483_v14, 5 }
 0x1d5   : > { %v2471_v19 = vrot.slane %v2469_v11, 5 }
 0x1d6   : > { %2581 = vmatmul.bf16.gmra.mxu3 %v2513_v23  ;;  %v2481_v16 = vrot.slane %v2480_v10, 4 }
 0x1d7   : > { %v2472_v23 = vsel %vm4102_vm8, %v2467_v17, %v2471_v19 }
 0x1d8   : > { %v2486_v20 = vsel %vm4102_vm8, %v2481_v16, %v2485_v18  ;;  %v2510_v28 = vunpack.c.l.b16 %v2472_v23 }
 0x1d9   : > { %v1222_v37 = vpop.f32.mrf.mxu1  ;;  %v2511_v26 = vunpack.c.l.b16 %v2486_v20 }
 0x1da   : > { %v1324_v39 = vadd.f32 %v1323_v29, %v1222_v37  ;;  %2206 = vmatmul.bf16.gmra.mxu1 %v3250_v33  ;;  %v3293_v37 = vld [vmem:[#allocation3 + $0x18] sm:$0xf] }
 0x1db   : > { %v2515_v29 = vpack.c.b16 %v2511_v26, %v2510_v28  ;;  %v3294_v38 = vor.u32 %v3503_v32, %v3293_v37  ;;  %v3528_v28 = vld [vmem:[#allocation12 + $0x30] sm:$0xff] }
 0x1dc   : > { %v4275_v43 = vadd.f32 %v1564_v34, %v1324_v39  ;;  %v3504_v39 = vld [vmem:[#allocation3 + $0x2c] sm:$0xf0]  ;;  %2706 = vmatpush.bf16.msrb.mxu1 %v3528_v28 }
 0x1dd   : > { %v3298_v42 = vor.u32 %v3504_v39, %v3297_v50 }
 0x1e1   : > { %v1224_v58 = vpop.f32.mrf.mxu1 }
 0x1e2   : > { %v1326_v63 = vadd.f32 %v1325_v57, %v1224_v58 }
 0x1e3   : > { %1831 = vmatmul.bf16.gmra.mxu2 %v3174_v60 }
 0x1e4   : > { %v4281_v7 = vadd.f32 %v1566_v3, %v1326_v63 }
 0x1e6   : > { %2586 = vmatmul.bf16.gmra.mxu3 %v2514_v6 }
 0x1ea   : > { %2211 = vmatmul.bf16.gmra.mxu1 %v3254_v15 }
 0x1f3   : > { %2330 = vmatmul.bf16.vlgmr.msrb.gmra.mxu2 %v3290_v27 }
 0x1f6   : > { %2591 = vmatmul.bf16.gmra.mxu3 %v2515_v29 }
 0x1f7   : > { %v1683_v30 = vpop.f32.mrf.mxu1 }
 0x1f8   : > { %v1703_v31 = vadd.f32 %v1683_v30, %v4250_v35 }
 0x1ff   : > { %v1685_v33 = vpop.f32.mrf.mxu1 }
 0x200   : > { %v1704_v34 = vadd.f32 %v1685_v33, %v4257_v5  ;;  %v4305_v33 = vld [vmem:[%s4377_s4] ss:$0 sm:$0xff] }
 0x203   : > { %2335 = vmatmul.bf16.gmra.mxu2 %v3294_v38 }
 0x207   : > { %v1688_v36 = vpop.f32.mrf.mxu1 }
 0x208   : > { %v1705_v47 = vadd.f32 %v1688_v36, %v4259_v21  ;;  %v3527_v36 = vld [vmem:[#allocation12 + $0x28] sm:$0xff] }
 0x209   : > { %v2063_v48 = vpop.f32.mrf.mxu3  ;;  %2707 = vmatpush.bf16.msrb.mxu1 %v3527_v36 }
 0x20f   : > { %v1690_v40 = vpop.f32.mrf.mxu1 }
 0x210   : > { %v1706_v41 = vadd.f32 %v1690_v40, %v4265_v45 }
 0x211   : > { %v2065_v53 = vpop.f32.mrf.mxu3 }
 0x213   : > { %2340 = vmatmul.bf16.gmra.mxu2 %v3298_v42 }
 0x217   : > { %v1693_v46 = vpop.f32.mrf.mxu1 }
 0x218   : > { %v1707_v35 = vadd.f32 %v1693_v46, %v4267_v2 }
 0x219   : > { %v2068_v55 = vpop.f32.mrf.mxu3 }
 0x21f   : > { %v1695_v51 = vpop.f32.mrf.mxu1 }
 0x220   : > { %v1708_v5 = vadd.f32 %v1695_v51, %v4273_v25  ;;  %v3526_v51 = vld [vmem:[#allocation12 + $0x20] sm:$0xff] }
 0x221   : > { %v2070_v57 = vpop.f32.mrf.mxu3  ;;  %2708 = vmatpush.bf16.msrb.mxu1 %v3526_v51 }
 0x223   : > { %2345 = vmatmul.bf16.gmra.mxu2 %v3302_v52 }
 0x227   : > { %v1698_v21 = vpop.f32.mrf.mxu1 }
 0x228   : > { %v1709_v54 = vadd.f32 %v1698_v21, %v4275_v43 }
 0x229   : > { %v2073_v62 = vpop.f32.mrf.mxu3 }
 0x22f   : > { %v4294_v59 = vpop.f32.mrf.mxu1 }
 0x231   : > { %v2075_v25 = vpop.f32.mrf.mxu3 }
 0x236   : > { %v1817_v45 = vpop.f32.mrf.mxu2 }
 0x237   : > { %v1837_v56 = vadd.f32 %v1817_v45, %v1703_v31  ;;  %v2197_v11 = vpop.f32.mrf.mxu1 }
 0x239   : > { %v2083_v58 = vadd.f32 %v2063_v48, %v1837_v56  ;;  %v2078_v8 = vpop.f32.mrf.mxu3 }
 0x23b   : > { %v2217_v27 = vadd.f32 %v2197_v11, %v2083_v58 }
 0x23e   : > { %v1819_v60 = vpop.f32.mrf.mxu2 }
 0x23f   : > { %v1838_v61 = vadd.f32 %v1819_v60, %v1704_v34  ;;  %v2199_v23 = vpop.f32.mrf.mxu1 }
 0x241   : > { %v2084_v2 = vadd.f32 %v2065_v53, %v1838_v61  ;;  %v4296_v14 = vpop.f32.mrf.mxu3 }
 0x243   : > { %v2218_v31 = vadd.f32 %v2199_v23, %v2084_v2 }
 0x246   : > { %v1822_v63 = vpop.f32.mrf.mxu2 }
 0x247   : > { %v1839_v1 = vadd.f32 %v1822_v63, %v1705_v47  ;;  %v2202_v30 = vpop.f32.mrf.mxu1 }
 0x249   : > { %v2085_v3 = vadd.f32 %v2068_v55, %v1839_v1  ;;  %v2577_v19 = vpop.f32.mrf.mxu3 }
 0x24b   : > { %v2219_v50 = vadd.f32 %v2202_v30, %v2085_v3 }
 0x24e   : > { %v1824_v0 = vpop.f32.mrf.mxu2 }
 0x24f   : > { %v1840_v4 = vadd.f32 %v1824_v0, %v1706_v41  ;;  %v2204_v41 = vpop.f32.mrf.mxu1 }
 0x251   : > { %v2086_v6 = vadd.f32 %v2070_v57, %v1840_v4  ;;  %v2579_v24 = vpop.f32.mrf.mxu3  ;;  %v3525_v57 = vld [vmem:[#allocation12 + $0x18] sm:$0xff] }
 0x252   : > { %2709 = vmatpush.bf16.msrb.mxu1 %v3525_v57 }
 0x253   : > { %v2220_v53 = vadd.f32 %v2204_v41, %v2086_v6 }
 0x256   : > { %v1827_v9 = vpop.f32.mrf.mxu2 }
 0x257   : > { %v1841_v10 = vadd.f32 %v1827_v9, %v1707_v35 }
 0x259   : > { %v2087_v43 = vadd.f32 %v2073_v62, %v1841_v10  ;;  %v2582_v34 = vpop.f32.mrf.mxu3 }
 0x25e   : > { %v1829_v12 = vpop.f32.mrf.mxu2 }
 0x25f   : > { %v1842_v13 = vadd.f32 %v1829_v12, %v1708_v5 }
 0x261   : > { %v2088_v15 = vadd.f32 %v2075_v25, %v1842_v13  ;;  %v2584_v5 = vpop.f32.mrf.mxu3 }
 0x266   : > { %v1832_v16 = vpop.f32.mrf.mxu2 }
 0x267   : > { %v1843_v17 = vadd.f32 %v1832_v16, %v1709_v54  ;;  %v2207_v54 = vpop.f32.mrf.mxu1 }
 0x268   : > { %v2221_v2 = vadd.f32 %v2207_v54, %v2087_v43 }
 0x269   : > { %v4298_v18 = vadd.f32 %v2078_v8, %v1843_v17  ;;  %v2587_v60 = vpop.f32.mrf.mxu3  ;;  %v1710_v17 = vadd.f32 %v4294_v59, %v4281_v7  ;;  %v3522_v7 = vld [vmem:[#allocation12] sm:$0xff] }
 0x26e   : > { %v4300_v20 = vpop.f32.mrf.mxu2 }
 0x26f   : > { %v2209_v25 = vpop.f32.mrf.mxu1  ;;  %v1844_v22 = vadd.f32 %v4300_v20, %v1710_v17 }
 0x270   : > { %v2222_v8 = vadd.f32 %v2209_v25, %v2088_v15 }
 0x271   : > { %v2589_v6 = vpop.f32.mrf.mxu3  ;;  %v2090_v30 = vadd.f32 %v4296_v14, %v1844_v22 }
 0x276   : > { %v2331_v26 = vpop.f32.mrf.mxu2 }
 0x277   : > { %v2351_v29 = vadd.f32 %v2331_v26, %v2217_v27  ;;  %v2212_v16 = vpop.f32.mrf.mxu1 }
 0x279   : > { %v2597_v32 = vadd.f32 %v2577_v19, %v2351_v29  ;;  %v2223_v19 = vadd.f32 %v2212_v16, %v4298_v18  ;;  %v2592_v26 = vpop.f32.mrf.mxu3  ;;  %v3523_v29 = vld [vmem:[#allocation12 + $0x8] sm:$0xff] }
 0x27b   : > { %v2609_v47 = vadd.f32 %v4305_v33, %v2597_v32 }
 0x27d   : > { %v2617_v42 = vmax.f32 %v2609_v47, 0.0 }
 0x27e   : > { %v2333_v37 = vpop.f32.mrf.mxu2 }
 0x27f   : > { %v2352_v38 = vadd.f32 %v2333_v37, %v2218_v31  ;;  %v2214_v59 = vpop.f32.mrf.mxu1 }
 0x281   : > { %v2598_v39 = vadd.f32 %v2579_v24, %v2352_v38  ;;  %v3524_v24 = vld [vmem:[#allocation12 + $0x10] sm:$0xff]  ;;  %v2594_v36 = vpop.f32.mrf.mxu3 }
 0x282   : > { %2710 = vmatpush.bf16.msrb.mxu1 %v3524_v24 }
 0x283   : > { %v2610_v40 = vadd.f32 %v4305_v33, %v2598_v39 }
 0x285   : > { %v2618_v46 = vmax.f32 %v2610_v40, 0.0 }
 0x286   : > { %v2336_v35 = vpop.f32.mrf.mxu2  ;;  %2711 = vmatpush.bf16.msrb.mxu1 %v3523_v29 }
 0x287   : > { %v2625_v48 = vadd.f32 %v2618_v46, %v2617_v42  ;;  %v2353_v49 = vadd.f32 %v2336_v35, %v2219_v50 }
 0x289   : > { %v2599_v44 = vadd.f32 %v2582_v34, %v2353_v49  ;;  %v2224_v34 = vadd.f32 %v2214_v59, %v2090_v30 }
 0x28a   : > { %2712 = vmatpush.bf16.msrb.mxu1 %v3522_v7 }
 0x28b   : > { %v2611_v52 = vadd.f32 %v4305_v33, %v2599_v44 }
 0x28d   : > { %v2619_v21 = vmax.f32 %v2611_v52, 0.0 }
 0x28e   : > { %v2338_v55 = vpop.f32.mrf.mxu2 }
 0x28f   : > { %v2626_v45 = vadd.f32 %v2625_v48, %v2619_v21  ;;  %v2354_v56 = vadd.f32 %v2338_v55, %v2220_v53 }
 0x291   : > { %v2600_v58 = vadd.f32 %v2584_v5, %v2354_v56 }
 0x293   : > { %v2612_v61 = vadd.f32 %v4305_v33, %v2600_v58 }
 0x295   : > { %v2620_v62 = vmax.f32 %v2612_v61, 0.0 }
 0x296   : > { %v2341_v63 = vpop.f32.mrf.mxu2 }
 0x297   : > { %v2627_v1 = vadd.f32 %v2626_v45, %v2620_v62  ;;  %v2355_v3 = vadd.f32 %v2341_v63, %v2221_v2 }
 0x299   : > { %v2601_v0 = vadd.f32 %v2587_v60, %v2355_v3 }
 0x29b   : > { %v2613_v4 = vadd.f32 %v4305_v33, %v2601_v0 }
 0x29d   : > { %v2621_v9 = vmax.f32 %v2613_v4, 0.0 }
 0x29e   : > { %v2343_v10 = vpop.f32.mrf.mxu2 }
 0x29f   : > { %v2628_v12 = vadd.f32 %v2627_v1, %v2621_v9  ;;  %v2356_v13 = vadd.f32 %v2343_v10, %v2222_v8 }
 0x2a1   : > { %v2602_v11 = vadd.f32 %v2589_v6, %v2356_v13 }
 0x2a3   : > { %v2614_v43 = vadd.f32 %v4305_v33, %v2602_v11 }
 0x2a5   : > { %v2622_v23 = vmax.f32 %v2614_v43, 0.0 }
 0x2a6   : > { %v2346_v27 = vpop.f32.mrf.mxu2 }
 0x2a7   : > { %v2629_v15 = vadd.f32 %v2628_v12, %v2622_v23  ;;  %v2357_v28 = vadd.f32 %v2346_v27, %v2223_v19 }
 0x2a9   : > { %v2603_v31 = vadd.f32 %v2592_v26, %v2357_v28 }
 0x2ab   : > { %v2615_v32 = vadd.f32 %v4305_v33, %v2603_v31 }
 0x2ad   : > { %v2623_v18 = vmax.f32 %v2615_v32, 0.0 }
 0x2ae   : > { %v2348_v37 = vpop.f32.mrf.mxu2 }
 0x2af   : > { %v2630_v20 = vadd.f32 %v2629_v15, %v2623_v18  ;;  %v2358_v38 = vadd.f32 %v2348_v37, %v2224_v34 }
 0x2b1   : > { %v2604_v47 = vadd.f32 %v2594_v36, %v2358_v38 }
 0x2b3   : > { %v2616_v39 = vadd.f32 %v4305_v33, %v2604_v47 }
 0x2b5   : > { %v2624_v40 = vmax.f32 %v2616_v39, 0.0 }
 0x2b7   : > { %v2631_v14 = vadd.f32 %v2630_v20, %v2624_v40 }
 0x2b9   : > { %v2632_v41 = vrot.slane %v2631_v14, 4 }
 0x2bb   : > { %v2633_v50 = vadd.f32 %v2632_v41, %v2631_v14 }
 0x2bd   : > { %v2634_v42 = vrot.slane %v2633_v50, 2 }
 0x2bf   : > { %v2635_v46 = vadd.f32 %v2634_v42, %v2633_v50 }
 0x2c1   : > { %v2636_v35 = vrot.slane %v2635_v46, 1 }
 0x2c3   : > { %v2637_v48 = vadd.f32 %v2636_v35, %v2635_v46 }
 0x2c5   : > { %v2638_v49 = vmul.f32 0.015625, %v2637_v48 }
 0x2c7   : > { %v2639_v51 = vpack.c.bf16 %v2638_v49, %v2638_v49  ;;  %2719 = vst [vmem:[%s384_s10] sm:$0x1] %v2638_v49 }
 0x2c9   : > { %2713 = vmatmul.bf16.vlgmr.msrb.gmra.mxu1 %v2639_v51 }
 0x2ca   : > { %3773 = shalt.err (!%p3770_p10)
}
 0x2cb   : > { %3553 = dma.vmem_to_hbm [thread:$0]  (%p3996_p3), %s2749_s20, 16, %s2751_s1, %s2725_s3   ;;  %v2656_v33 = vld [vmem:[%s4379_s6] sm:$0x1] }
 0x2cc   : > { %s2733_s14 = scalar_lea.hbm %s4380_s7, %s3926_s9  ;;  %s378_s13 = scalar_lea.vmem [#allocation14], %s4026_s19 }
 0x2cd   : > { %s2735_s11 = sshll.u32 %s378_s13, 4  ;;  %s2737_s23 = sshll.u32 %s2733_s14, 4  ;;  %s2736_s11 = int_to_ptr.vmem [resolvable:$true] %s2735_s11  ;;  %s2738_s23 = int_to_ptr.hbm [resolvable:$true] %s2737_s23 }
 0x2ce   : > { %s2721_s24 = scalar_lea.sflag [#allocation8], %s4026_s19  ;;  %s3788_s17 = sshra.s32 %s2738_s23, 4  ;;  %s3789_s17 = int_to_ptr.hbm [resolvable:$true] %s3788_s17 }
 0x2cf   : > { %s3790_s20 = scalar_lea.hbm %s3789_s17, 1  ;;  %s3794_s3 = scalar_lea.hbm %s4380_s7, 2 }
 0x2d0   : > { %p3791_p12 = scmp.ne.s32.totalorder %s3789_s17, %s3790_s20  ;;  %p3795_p5 = scmp.lt.s32.totalorder %s3789_s17, %s4380_s7 }
 0x2d1   : > { %p3796_p7 = scmp.lt.s32.totalorder %s3794_s3, %s3790_s20 }
 0x2d2   : > { %p3792_p13 = pnand %p3791_p12, %p3996_p3 }
 0x2d3   : > { %p3797_p1 = por %p3796_p7, %p3795_p5 }
 0x2d4   : > { %p3793_p0 = pneg %p3792_p13 }
 0x2d6   : > { %p3798_p4 = pnand %p3797_p1, %p3793_p0 }
 0x346   : > { %v2714_v5 = vpop.f32.mrf.mxu1 }
 0x347   : > { %v2715_v44 = vadd.f32 %v2714_v5, %v2656_v33 }
 0x349   : > { %2718 = vst [vmem:[%s378_s13] sm:$0x1] %v2715_v44 }
 0x34a   : > { %3801 = shalt.err (!%p3798_p4)
}
 0x34b   : > { %3552 = dma.vmem_to_hbm [thread:$0]  (%p3996_p3), %s2736_s11, 16, %s2738_s23, %s2721_s24  }
 0x34e   : > { %v2716_v52 = vpop.f32.mrf.mxu1 }
 0x34f PF: > { %s2762_s19 = sand.u32 1, %s3840_s27   ;;  %p4402_p8 = scmp.ge.s32.totalorder %s3852_s30, 2 }
 0x350   : > { %s2763_s15 = scalar_lea.sflag [#allocation8], %s2762_s19 }
 0x351   : > { %p3571_p11 = pnand %p4402_p8, %p3940_p6 }
 0x353   : > { %p3572_p9 = pneg %p3571_p11 }
 0x355   : > { %3831 = dma.done.wait (%p3572_p9), %s2763_s15, 16  }
 0x356   : > { %3833 = vsyncadd (%p3572_p9), %s2763_s15, 4294967280  ;;  %s2772_s14 = scalar_lea.sflag [#allocation16], %s2762_s19 }
 0x357   : > { %3835 = dma.done.wait (%p3572_p9), %s2772_s14, 16  }
 0x358   : > { %3837 = vsyncadd (%p3572_p9), %s2772_s14, 4294967280  ;;  %p27_p3 = scmp.ge.s32.totalorder %s3978_s18, 4   ;;  %s4403_s27 = smov %s3844_s28 }
 0x359   : > { %s4404_s28 = smov %s3848_s29  ;;  %s4405_s29 = smov %s3992_s25 }
 0x35a   : > { %s4406_s30 = smov %s3978_s18  ;;  %29 = sbr.rel (!%p27_p3) target bundleno = 12 (0xc), region = 132 }
 0x35f   :  { %2777 = vsyncpa [#allocation7], 1 }
 0x360   :  { %2779 = vsyncpa [#allocation7 + $0x1], 1 }
 0x361   :  { %2780 = vsyncpa [#allocation10], 1 }
 0x362   :  { %2781 = vsyncpa [#allocation13], 1 }
 0x363   :  { %2782 = vsyncpa [#allocation8], 1 }
 0x364   :  { %2784 = vsyncpa [#allocation8 + $0x1], 1 }
 0x365   :  { %2785 = vsyncpa [#allocation16], 1 }
 0x366   :  { %2787 = vsyncpa [#allocation16 + $0x1], 1 }

</bundles_post_ra>
